<compile_context>
chip_gen: v7x
topology: tpu7x:2x2x1
jax: 0.10.0
libtpu: 0.0.40
codegen_flags: <defaults>
</compile_context>

<pallas_src>
import functools

import jax
import jax.numpy as jnp
from jax import lax
from jax.experimental import pallas as pl
from jax.experimental.pallas import tpu as pltpu

_LANES = 128
_SUBLANES = 8
_F32B = 4


def _vmem_capacity_bytes():
    """Best-effort per-core VMEM capacity query; conservative fallback."""
    try:
        info = pltpu.get_tpu_info()
        for attr in ("vmem_capacity_bytes", "vmem_bytes", "vmem_size_bytes"):
            v = getattr(info, attr, None)
            if v:
                return int(v)
    except Exception:
        pass
    return 64 << 20           # safe on every generation (v7x: 64 MiB / TC)


def _divisors(n):
    return [d for d in range(1, n + 1) if n % d == 0]


def _pick_tile_h(H, W, Cpad, pad, N, vmem_cap):
    """Largest H-tile that (a) divides H, (b) fits the VMEM budget with
    double-buffered I/O tiles + halo scratch, and (c) leaves >= 2 grid steps
    when N == 1 so both v7x TensorCores get work."""
    bytes_per_row = W * Cpad * _F32B
    budget = int(vmem_cap * 0.45)          # ~6 TH-row-sized buffers live
    th_cap = max(budget // (6 * bytes_per_row), 1)
    max_th = H if N >= 2 else max(H // 2, 1)
    target = min(th_cap, max_th, H)
    feasible = [d for d in _divisors(H)
                if d <= target and (d == H or d >= pad)]
    if feasible:
        return max(feasible)
    return H                               # fall back: whole image


def _pdc_block_kernel(x_tile_ref, x_hbm_ref, w1_ref, w2_ref, o_ref,
                      xpad_ref, sems, *, TH, CH, W, Cpad, K):
    """One (image, H-tile) per grid step.

    x_tile_ref : (1, TH, W, Cpad)  auto-pipelined input tile (body + residual)
    x_hbm_ref  : (N, H, W, Cpad)   full input in HBM (pl.ANY) -> halo rows only
    w1_ref     : (K, K, Cpad)      depthwise taps (zero for padded channels)
    w2_ref     : (Cpad, Cpad)      1x1 pointwise weights (zero-padded)
    o_ref      : (1, TH, W, Cpad)
    xpad_ref   : (TH+2p, lpad+W+p, Cpad) VMEM scratch (zero-bordered window)
    sems       : (3,) DMA semaphores (body, top halo, bottom halo)
    """
    pad = K // 2
    lpad = _SUBLANES * ((pad + _SUBLANES - 1) // _SUBLANES)  # 8-aligned body
    base = lpad - pad                                        # first read column
    THp = TH + 2 * pad
    Wsc = lpad + W + pad

    n = pl.program_id(0)
    t = pl.program_id(1)
    nH = pl.num_programs(1)

    # ------------------------------------------------------------------
    # 1) Start all window-building DMAs, then do the zero-border stores
    #    while they are in flight (store regions are disjoint from every
    #    DMA destination), then wait once before the first scratch read.
    # ------------------------------------------------------------------
    body_dst = xpad_ref.at[pl.ds(pad, TH), pl.ds(lpad, W), :]
    top_dst = xpad_ref.at[pl.ds(0, pad), pl.ds(lpad, W), :]
    bot_dst = xpad_ref.at[pl.ds(pad + TH, pad), pl.ds(lpad, W), :]

    body_cp = pltpu.make_async_copy(x_tile_ref.at[0], body_dst, sems.at[0])
    body_cp.start()

    @pl.when(t > 0)                          # top halo rows from HBM
    def _():
        pltpu.make_async_copy(
            x_hbm_ref.at[n, pl.ds(t * TH - pad, pad), :, :],
            top_dst, sems.at[1]).start()

    @pl.when(t < nH - 1)                     # bottom halo rows from HBM
    def _():
        pltpu.make_async_copy(
            x_hbm_ref.at[n, pl.ds((t + 1) * TH, pad), :, :],
            bot_dst, sems.at[2]).start()

    # zero borders (overlapped with the in-flight DMAs; disjoint regions)
    zcol = jnp.zeros((THp, pad, Cpad), jnp.float32)
    xpad_ref[:, base:lpad, :] = zcol          # left image border
    xpad_ref[:, lpad + W:, :] = zcol          # right image border

    zrow = jnp.zeros((pad, Wsc, Cpad), jnp.float32)

    @pl.when(t == 0)                          # top image border
    def _():
        xpad_ref[0:pad, :, :] = zrow

    @pl.when(t == nH - 1)                     # bottom image border
    def _():
        xpad_ref[pad + TH:, :, :] = zrow

    # hoisted 1x1 weight load (overlaps the DMAs as well)
    w2 = w2_ref[...]

    # wait for every outstanding DMA before reading xpad_ref
    body_cp.wait()

    @pl.when(t > 0)
    def _():
        pltpu.make_async_copy(
            x_hbm_ref.at[n, pl.ds(0, pad), :, :], top_dst, sems.at[1]).wait()

    @pl.when(t < nH - 1)
    def _():
        pltpu.make_async_copy(
            x_hbm_ref.at[n, pl.ds(0, pad), :, :], bot_dst, sems.at[2]).wait()

    # ------------------------------------------------------------------
    # 2) Fused depthwise + ReLU + 1x1 + residual over CH-row chunks.
    #    dw loop is outermost: only K unaligned sublane-shifted loads per
    #    chunk, each reused for the K dh offsets (first-axis value slices).
    # ------------------------------------------------------------------
    nchunks = TH // CH

    def chunk_body(c):
        if isinstance(c, int):
            r = c * CH
        else:
            r = pl.multiple_of(c * CH, CH)

        acc = jnp.zeros((CH, W, Cpad), jnp.float32)
        for dw in range(K):
            col = xpad_ref[pl.ds(r, CH + 2 * pad),
                           base + dw:base + dw + W, :]       # (CH+2p, W, Cpad)
            for dh in range(K):
                acc = acc + col[dh:dh + CH, :, :] * w1_ref[dh, dw, :]

        y = jnp.maximum(acc, 0.0)                             # ReLU
        y2 = jnp.dot(y.reshape(CH * W, Cpad), w2,             # MXU 1x1 conv
                     preferred_element_type=jnp.float32)
        out = y2.reshape(CH, W, Cpad) + x_tile_ref[0, pl.ds(r, CH), :, :]
        o_ref[0, pl.ds(r, CH), :, :] = out.astype(o_ref.dtype)

    if nchunks <= 8:
        for c in range(nchunks):              # fully unrolled, static indices
            chunk_body(c)
    else:
        def body(c, carry):                   # bound live ranges on long tiles
            chunk_body(c)
            return carry
        lax.fori_loop(0, nchunks, body, 0)


def pdc_block_converted(x_nchw, w_dw, w_pw, *, pdc="cv", tile_h=None):
    """Forward pass of PDCBlock_converted (stride=1).

    x_nchw : (N, C, H, W) float32
    w_dw   : (C, 1, K, K) depthwise conv weight (K=5 if pdc=='rd' else 3)
    w_pw   : (Cout, C, 1, 1) pointwise conv weight
    returns: (N, Cout, H, W)
    """
    N, C, H, W = x_nchw.shape
    K = 5 if pdc == "rd" else 3
    pad = K // 2
    Cout = w_pw.shape[0]
    assert Cout == C, "stride=1 residual add requires ouplane == inplane"
    assert w_dw.shape == (C, 1, K, K)

    Cpad = _LANES * ((C + _LANES - 1) // _LANES)       # lane-dense channels
    vmem_cap = _vmem_capacity_bytes()

    if tile_h is not None:
        TH = tile_h
        if H % TH != 0 or (H // TH > 1 and TH < pad):
            TH = H                                     # fall back: whole image
    else:
        TH = _pick_tile_h(H, W, Cpad, pad, N, vmem_cap)
    nH = H // TH

    # chunk rows for the fused inner loop (largest divisor of TH <= 8)
    CH = max(d for d in _divisors(TH) if d <= 8)

    # ---- layout glue (plain JAX). In a full NHWC / channel-padded pipeline
    # the transposes and the channel pad disappear.
    x = jnp.transpose(x_nchw, (0, 2, 3, 1))            # NHWC
    if Cpad != C:
        x = jnp.pad(x, ((0, 0), (0, 0), (0, 0), (0, Cpad - C)))
    w1 = jnp.transpose(w_dw[:, 0, :, :], (1, 2, 0))    # (K, K, C)
    w2 = jnp.transpose(w_pw[:, :, 0, 0], (1, 0))       # (C, Cout)
    if Cpad != C:
        w1 = jnp.pad(w1, ((0, 0), (0, 0), (0, Cpad - C)))
        w2 = jnp.pad(w2, ((0, Cpad - C), (0, Cpad - Cout)))

    # ---- VMEM budget: double-buffered in/out tiles + halo scratch + weights
    # + per-chunk temporaries, capped against the generation's VMEM capacity.
    lpad = _SUBLANES * ((pad + _SUBLANES - 1) // _SUBLANES)
    tile_bytes = TH * W * Cpad * _F32B
    scratch_bytes = (TH + 2 * pad) * (lpad + W + pad) * Cpad * _F32B
    w_bytes = (K * K * Cpad + Cpad * Cpad) * _F32B
    chunk_bytes = 4 * CH * W * Cpad * _F32B
    est = 4 * tile_bytes + scratch_bytes + 2 * w_bytes + chunk_bytes
    vmem_limit = int(min(max(int(est * 1.5), 8 << 20), int(vmem_cap * 0.9)))

    kernel = functools.partial(_pdc_block_kernel, TH=TH, CH=CH, W=W,
                               Cpad=Cpad, K=K)

    out_nhwc = pl.pallas_call(
        kernel,
        out_shape=jax.ShapeDtypeStruct((N, H, W, Cpad), x.dtype),
        grid_spec=pltpu.PrefetchScalarGridSpec(
            num_scalar_prefetch=0,
            grid=(N, nH),
            in_specs=[
                pl.BlockSpec((1, TH, W, Cpad), lambda n, t: (n, t, 0, 0)),
                pl.BlockSpec(memory_space=pl.ANY),      # full x in HBM (halos)
                pl.BlockSpec((K, K, Cpad), lambda n, t: (0, 0, 0)),
                pl.BlockSpec((Cpad, Cpad), lambda n, t: (0, 0)),
            ],
            out_specs=pl.BlockSpec((1, TH, W, Cpad), lambda n, t: (n, t, 0, 0)),
            scratch_shapes=[
                pltpu.VMEM((TH + 2 * pad, lpad + W + pad, Cpad), jnp.float32),
                pltpu.SemaphoreType.DMA((3,)),
            ],
        ),
        compiler_params=pltpu.CompilerParams(
            dimension_semantics=("parallel", "parallel"),
            vmem_limit_bytes=vmem_limit),
    )(x, x, w1, w2)

    out_nhwc = out_nhwc[..., :Cout]                    # drop padded channels
    return jnp.transpose(out_nhwc, (0, 3, 1, 2))       # back to NCHW


def _reference(x_nchw, w_dw, w_pw):
    """Pure-JAX reference (lax.conv) for correctness check."""
    N, C, H, W = x_nchw.shape
    x = jnp.transpose(x_nchw, (0, 2, 3, 1))            # NHWC
    rhs_dw = jnp.transpose(w_dw, (2, 3, 1, 0))         # (K,K,1,C) HWIO
    y = lax.conv_general_dilated(
        x, rhs_dw, window_strides=(1, 1), padding="SAME",
        feature_group_count=C,
        dimension_numbers=("NHWC", "HWIO", "NHWC"))
    y = jnp.maximum(y, 0.0)
    rhs_pw = jnp.transpose(w_pw, (2, 3, 1, 0))         # (1,1,C,Cout)
    y = lax.conv_general_dilated(
        y, rhs_pw, window_strides=(1, 1), padding="VALID",
        dimension_numbers=("NHWC", "HWIO", "NHWC"))
    y = y + x
    return jnp.transpose(y, (0, 3, 1, 2))


if __name__ == "__main__":
    key = jax.random.PRNGKey(0)
    kx, k1, k2, k3, k4 = jax.random.split(key, 5)

    N, C, H, W = 2, 4, 16, 16
    x = jax.random.normal(kx, (N, C, H, W), dtype=jnp.float32)

    # --- test 1: 'cv' (3x3 depthwise), two H-tiles -> exercises halo DMAs ---
    w_dw3 = jax.random.normal(k1, (C, 1, 3, 3), dtype=jnp.float32) * 0.1
    w_pw3 = jax.random.normal(k2, (C, C, 1, 1), dtype=jnp.float32) * 0.1
    out3 = jax.block_until_ready(
        pdc_block_converted(x, w_dw3, w_pw3, pdc="cv", tile_h=8))
    ref3 = jax.block_until_ready(_reference(x, w_dw3, w_pw3))
    assert out3.shape == (N, C, H, W)
    assert jnp.allclose(out3, ref3, atol=1e-4, rtol=1e-4), "cv mismatch vs reference"

    # --- test 2: 'rd' (5x5 depthwise), four H-tiles ---
    w_dw5 = jax.random.normal(k3, (C, 1, 5, 5), dtype=jnp.float32) * 0.1
    w_pw5 = jax.random.normal(k4, (C, C, 1, 1), dtype=jnp.float32) * 0.1
    out5 = jax.block_until_ready(
        pdc_block_converted(x, w_dw5, w_pw5, pdc="rd", tile_h=4))
    ref5 = jax.block_until_ready(_reference(x, w_dw5, w_pw5))
    assert out5.shape == (N, C, H, W)
    assert jnp.allclose(out5, ref5, atol=1e-4, rtol=1e-4), "rd mismatch vs reference"

    # --- test 3: auto tile selection, single image (nH forced >= 2) ---
    x1 = x[:1]
    outa = jax.block_until_ready(pdc_block_converted(x1, w_dw3, w_pw3, pdc="cv"))
    refa = jax.block_until_ready(_reference(x1, w_dw3, w_pw3))
    assert outa.shape == (1, C, H, W)
    assert jnp.allclose(outa, refa, atol=1e-4, rtol=1e-4), "auto-tile mismatch"

    print("KERNEL_OK")
</pallas_src>

<mosaic_0001>
module attributes {stable_mosaic.version = 11 : i64} {
  func.func @_pdc_block_kernel(%arg0: i32, %arg1: i32, %arg2: memref<1x8x16x128xf32, #tpu.memory_space<vmem>>, %arg3: memref<2x16x16x128xf32, #tpu.memory_space<any>>, %arg4: memref<3x3x128xf32, #tpu.memory_space<vmem>>, %arg5: memref<128x128xf32, #tpu.memory_space<vmem>>, %arg6: memref<1x8x16x128xf32, #tpu.memory_space<vmem>>, %arg7: memref<10x25x128xf32, #tpu.memory_space<vmem>>, %arg8: memref<3x!tpu.dma_semaphore, #tpu.memory_space<semaphore_mem>>) attributes {dimension_semantics = [#tpu.dimension_semantics<parallel>, #tpu.dimension_semantics<parallel>], iteration_bounds = array<i64: 2, 2>, scalar_prefetch = 0 : i64, scratch_operands = 2 : i64, tpu.core_type = #tpu.core_type<tc>, window_params = [{transform_indices = @transform_0, window_bounds = array<i64: 1, 8, 16, 128>}, {}, {pipeline_mode = #tpu.pipeline_mode<synchronous>, transform_indices = @transform_2, window_bounds = array<i64: 3, 3, 128>}, {pipeline_mode = #tpu.pipeline_mode<synchronous>, transform_indices = @transform_3, window_bounds = array<i64: 128, 128>}, {transform_indices = @transform_4, window_bounds = array<i64: 1, 8, 16, 128>}]} {
    %c0_i32 = arith.constant 0 : i32
    %c0_i32_0 = arith.constant 0 : i32
    %c0_i32_1 = arith.constant 0 : i32
    %c0_i32_2 = arith.constant 0 : i32
    %c0_i32_3 = arith.constant 0 : i32
    %0 = tpu.memref_slice %arg2[%c0_i32, %c0_i32_1, %c0_i32_2, %c0_i32_3] : memref<1x8x16x128xf32, #tpu.memory_space<vmem>> -> memref<1x8x16x128xf32, #tpu.memory_space<vmem>>
    %1 = tpu.memref_squeeze %0 : memref<1x8x16x128xf32, #tpu.memory_space<vmem>> -> memref<8x16x128xf32, #tpu.memory_space<vmem>>
    %c1_i32 = arith.constant 1 : i32
    %c8_i32 = arith.constant 8 : i32
    %c0_i32_4 = arith.constant 0 : i32
    %2 = tpu.memref_slice %arg7[%c1_i32, %c8_i32, %c0_i32_4] : memref<10x25x128xf32, #tpu.memory_space<vmem>> -> memref<8x16x128xf32, #tpu.memory_space<vmem>>
    %3 = tpu.memref_slice %arg8[%c0_i32_0] : memref<3x!tpu.dma_semaphore, #tpu.memory_space<semaphore_mem>> -> memref<1x!tpu.dma_semaphore, #tpu.memory_space<semaphore_mem>>
    %4 = tpu.memref_squeeze %3 : memref<1x!tpu.dma_semaphore, #tpu.memory_space<semaphore_mem>> -> memref<!tpu.dma_semaphore, #tpu.memory_space<semaphore_mem>>
    tpu.enqueue_dma source(%1 : memref<8x16x128xf32, #tpu.memory_space<vmem>>) target(%2 : memref<8x16x128xf32, #tpu.memory_space<vmem>>) target_semaphore(%4 : memref<!tpu.dma_semaphore, #tpu.memory_space<semaphore_mem>>)
    %c0_i32_5 = arith.constant 0 : i32
    %5 = arith.cmpi sgt, %arg1, %c0_i32_5 : i32
    %6 = arith.extui %5 : i1 to i32
    %c0_i32_6 = arith.constant 0 : i32
    %7 = arith.cmpi ne, %6, %c0_i32_6 : i32
    scf.if %7 {
      %c8_i32_74 = arith.constant 8 : i32
      %111 = arith.muli %arg1, %c8_i32_74 : i32
      %c1_i32_75 = arith.constant 1 : i32
      %112 = arith.subi %111, %c1_i32_75 : i32
      %c1_i32_76 = arith.constant 1 : i32
      %c0_i32_77 = arith.constant 0 : i32
      %c0_i32_78 = arith.constant 0 : i32
      %113 = tpu.memref_slice %arg3[%arg0, %112, %c0_i32_77, %c0_i32_78] : memref<2x16x16x128xf32, #tpu.memory_space<any>> -> memref<1x1x16x128xf32, #tpu.memory_space<any>>
      %114 = tpu.memref_squeeze %113 : memref<1x1x16x128xf32, #tpu.memory_space<any>> -> memref<1x16x128xf32, #tpu.memory_space<any>>
      %c0_i32_79 = arith.constant 0 : i32
      %c8_i32_80 = arith.constant 8 : i32
      %c0_i32_81 = arith.constant 0 : i32
      %115 = tpu.memref_slice %arg7[%c0_i32_79, %c8_i32_80, %c0_i32_81] : memref<10x25x128xf32, #tpu.memory_space<vmem>> -> memref<1x16x128xf32, #tpu.memory_space<vmem>>
      %116 = tpu.memref_slice %arg8[%c1_i32_76] : memref<3x!tpu.dma_semaphore, #tpu.memory_space<semaphore_mem>> -> memref<1x!tpu.dma_semaphore, #tpu.memory_space<semaphore_mem>>
      %117 = tpu.memref_squeeze %116 : memref<1x!tpu.dma_semaphore, #tpu.memory_space<semaphore_mem>> -> memref<!tpu.dma_semaphore, #tpu.memory_space<semaphore_mem>>
      tpu.enqueue_dma source(%114 : memref<1x16x128xf32, #tpu.memory_space<any>>) target(%115 : memref<1x16x128xf32, #tpu.memory_space<vmem>>) target_semaphore(%117 : memref<!tpu.dma_semaphore, #tpu.memory_space<semaphore_mem>>)
    } else {
    }
    %c1_i32_7 = arith.constant 1 : i32
    %8 = arith.cmpi slt, %arg1, %c1_i32_7 : i32
    %9 = arith.extui %8 : i1 to i32
    %c0_i32_8 = arith.constant 0 : i32
    %10 = arith.cmpi ne, %9, %c0_i32_8 : i32
    scf.if %10 {
      %c1_i32_74 = arith.constant 1 : i32
      %111 = arith.addi %arg1, %c1_i32_74 : i32
      %c8_i32_75 = arith.constant 8 : i32
      %112 = arith.muli %111, %c8_i32_75 : i32
      %c2_i32 = arith.constant 2 : i32
      %c0_i32_76 = arith.constant 0 : i32
      %c0_i32_77 = arith.constant 0 : i32
      %113 = tpu.memref_slice %arg3[%arg0, %112, %c0_i32_76, %c0_i32_77] : memref<2x16x16x128xf32, #tpu.memory_space<any>> -> memref<1x1x16x128xf32, #tpu.memory_space<any>>
      %114 = tpu.memref_squeeze %113 : memref<1x1x16x128xf32, #tpu.memory_space<any>> -> memref<1x16x128xf32, #tpu.memory_space<any>>
      %c9_i32 = arith.constant 9 : i32
      %c8_i32_78 = arith.constant 8 : i32
      %c0_i32_79 = arith.constant 0 : i32
      %115 = tpu.memref_slice %arg7[%c9_i32, %c8_i32_78, %c0_i32_79] : memref<10x25x128xf32, #tpu.memory_space<vmem>> -> memref<1x16x128xf32, #tpu.memory_space<vmem>>
      %116 = tpu.memref_slice %arg8[%c2_i32] : memref<3x!tpu.dma_semaphore, #tpu.memory_space<semaphore_mem>> -> memref<1x!tpu.dma_semaphore, #tpu.memory_space<semaphore_mem>>
      %117 = tpu.memref_squeeze %116 : memref<1x!tpu.dma_semaphore, #tpu.memory_space<semaphore_mem>> -> memref<!tpu.dma_semaphore, #tpu.memory_space<semaphore_mem>>
      tpu.enqueue_dma source(%114 : memref<1x16x128xf32, #tpu.memory_space<any>>) target(%115 : memref<1x16x128xf32, #tpu.memory_space<vmem>>) target_semaphore(%117 : memref<!tpu.dma_semaphore, #tpu.memory_space<semaphore_mem>>)
    } else {
    }
    %cst = arith.constant 0.000000e+00 : f32
    %11 = vector.broadcast %cst : f32 to vector<10x1x128xf32>
    %c0 = arith.constant 0 : index
    %c7 = arith.constant 7 : index
    %c0_9 = arith.constant 0 : index
    %12 = vector.load %arg7[%c0, %c7, %c0_9] : memref<10x25x128xf32, #tpu.memory_space<vmem>>, vector<10x1x128xf32>
    tpu.vector_store %arg7[%c0, %c7, %c0_9], %11 {strides = array<i32>} : memref<10x25x128xf32, #tpu.memory_space<vmem>>, vector<10x1x128xf32>,
    %c0_10 = arith.constant 0 : index
    %c24 = arith.constant 24 : index
    %c0_11 = arith.constant 0 : index
    %13 = vector.load %arg7[%c0_10, %c24, %c0_11] : memref<10x25x128xf32, #tpu.memory_space<vmem>>, vector<10x1x128xf32>
    tpu.vector_store %arg7[%c0_10, %c24, %c0_11], %11 {strides = array<i32>} : memref<10x25x128xf32, #tpu.memory_space<vmem>>, vector<10x1x128xf32>,
    %cst_12 = arith.constant 0.000000e+00 : f32
    %14 = vector.broadcast %cst_12 : f32 to vector<1x25x128xf32>
    %c0_i32_13 = arith.constant 0 : i32
    %15 = arith.cmpi eq, %arg1, %c0_i32_13 : i32
    %16 = arith.extui %15 : i1 to i32
    %c0_i32_14 = arith.constant 0 : i32
    %17 = arith.cmpi ne, %16, %c0_i32_14 : i32
    scf.if %17 {
      %c0_74 = arith.constant 0 : index
      %c0_75 = arith.constant 0 : index
      %c0_76 = arith.constant 0 : index
      %111 = vector.load %arg7[%c0_74, %c0_75, %c0_76] : memref<10x25x128xf32, #tpu.memory_space<vmem>>, vector<1x25x128xf32>
      tpu.vector_store %arg7[%c0_74, %c0_75, %c0_76], %14 {strides = array<i32>} : memref<10x25x128xf32, #tpu.memory_space<vmem>>, vector<1x25x128xf32>,
    } else {
    }
    %c1_i32_15 = arith.constant 1 : i32
    %18 = arith.cmpi eq, %arg1, %c1_i32_15 : i32
    %19 = arith.extui %18 : i1 to i32
    %c0_i32_16 = arith.constant 0 : i32
    %20 = arith.cmpi ne, %19, %c0_i32_16 : i32
    scf.if %20 {
      %c9_74 = arith.constant 9 : index
      %c0_75 = arith.constant 0 : index
      %c0_76 = arith.constant 0 : index
      %111 = vector.load %arg7[%c9_74, %c0_75, %c0_76] : memref<10x25x128xf32, #tpu.memory_space<vmem>>, vector<1x25x128xf32>
      tpu.vector_store %arg7[%c9_74, %c0_75, %c0_76], %14 {strides = array<i32>} : memref<10x25x128xf32, #tpu.memory_space<vmem>>, vector<1x25x128xf32>,
    } else {
    }
    %c0_17 = arith.constant 0 : index
    %c0_18 = arith.constant 0 : index
    %21 = vector.load %arg5[%c0_17, %c0_18] : memref<128x128xf32, #tpu.memory_space<vmem>>, vector<128x128xf32>
    %c0_i32_19 = arith.constant 0 : i32
    %c0_i32_20 = arith.constant 0 : i32
    %c0_i32_21 = arith.constant 0 : i32
    %c0_i32_22 = arith.constant 0 : i32
    %c0_i32_23 = arith.constant 0 : i32
    %22 = tpu.memref_slice %arg2[%c0_i32_19, %c0_i32_21, %c0_i32_22, %c0_i32_23] : memref<1x8x16x128xf32, #tpu.memory_space<vmem>> -> memref<1x8x16x128xf32, #tpu.memory_space<vmem>>
    %23 = tpu.memref_squeeze %22 : memref<1x8x16x128xf32, #tpu.memory_space<vmem>> -> memref<8x16x128xf32, #tpu.memory_space<vmem>>
    %c1_i32_24 = arith.constant 1 : i32
    %c8_i32_25 = arith.constant 8 : i32
    %c0_i32_26 = arith.constant 0 : i32
    %24 = tpu.memref_slice %arg7[%c1_i32_24, %c8_i32_25, %c0_i32_26] : memref<10x25x128xf32, #tpu.memory_space<vmem>> -> memref<8x16x128xf32, #tpu.memory_space<vmem>>
    %25 = tpu.memref_slice %arg8[%c0_i32_20] : memref<3x!tpu.dma_semaphore, #tpu.memory_space<semaphore_mem>> -> memref<1x!tpu.dma_semaphore, #tpu.memory_space<semaphore_mem>>
    %26 = tpu.memref_squeeze %25 : memref<1x!tpu.dma_semaphore, #tpu.memory_space<semaphore_mem>> -> memref<!tpu.dma_semaphore, #tpu.memory_space<semaphore_mem>>
    tpu.wait_dma2 semaphore(%26 : memref<!tpu.dma_semaphore, #tpu.memory_space<semaphore_mem>>) src(%23 : memref<8x16x128xf32, #tpu.memory_space<vmem>>) dst(%24 : memref<8x16x128xf32, #tpu.memory_space<vmem>>)
    %c0_i32_27 = arith.constant 0 : i32
    %27 = arith.cmpi sgt, %arg1, %c0_i32_27 : i32
    %28 = arith.extui %27 : i1 to i32
    %c0_i32_28 = arith.constant 0 : i32
    %29 = arith.cmpi ne, %28, %c0_i32_28 : i32
    scf.if %29 {
      %c1_i32_74 = arith.constant 1 : i32
      %c0_i32_75 = arith.constant 0 : i32
      %c0_i32_76 = arith.constant 0 : i32
      %c0_i32_77 = arith.constant 0 : i32
      %111 = tpu.memref_slice %arg3[%arg0, %c0_i32_75, %c0_i32_76, %c0_i32_77] : memref<2x16x16x128xf32, #tpu.memory_space<any>> -> memref<1x1x16x128xf32, #tpu.memory_space<any>>
      %112 = tpu.memref_squeeze %111 : memref<1x1x16x128xf32, #tpu.memory_space<any>> -> memref<1x16x128xf32, #tpu.memory_space<any>>
      %c0_i32_78 = arith.constant 0 : i32
      %c8_i32_79 = arith.constant 8 : i32
      %c0_i32_80 = arith.constant 0 : i32
      %113 = tpu.memref_slice %arg7[%c0_i32_78, %c8_i32_79, %c0_i32_80] : memref<10x25x128xf32, #tpu.memory_space<vmem>> -> memref<1x16x128xf32, #tpu.memory_space<vmem>>
      %114 = tpu.memref_slice %arg8[%c1_i32_74] : memref<3x!tpu.dma_semaphore, #tpu.memory_space<semaphore_mem>> -> memref<1x!tpu.dma_semaphore, #tpu.memory_space<semaphore_mem>>
      %115 = tpu.memref_squeeze %114 : memref<1x!tpu.dma_semaphore, #tpu.memory_space<semaphore_mem>> -> memref<!tpu.dma_semaphore, #tpu.memory_space<semaphore_mem>>
      tpu.wait_dma2 semaphore(%115 : memref<!tpu.dma_semaphore, #tpu.memory_space<semaphore_mem>>) src(%112 : memref<1x16x128xf32, #tpu.memory_space<any>>) dst(%113 : memref<1x16x128xf32, #tpu.memory_space<vmem>>)
    } else {
    }
    %c1_i32_29 = arith.constant 1 : i32
    %30 = arith.cmpi slt, %arg1, %c1_i32_29 : i32
    %31 = arith.extui %30 : i1 to i32
    %c0_i32_30 = arith.constant 0 : i32
    %32 = arith.cmpi ne, %31, %c0_i32_30 : i32
    scf.if %32 {
      %c2_i32 = arith.constant 2 : i32
      %c0_i32_74 = arith.constant 0 : i32
      %c0_i32_75 = arith.constant 0 : i32
      %c0_i32_76 = arith.constant 0 : i32
      %111 = tpu.memref_slice %arg3[%arg0, %c0_i32_74, %c0_i32_75, %c0_i32_76] : memref<2x16x16x128xf32, #tpu.memory_space<any>> -> memref<1x1x16x128xf32, #tpu.memory_space<any>>
      %112 = tpu.memref_squeeze %111 : memref<1x1x16x128xf32, #tpu.memory_space<any>> -> memref<1x16x128xf32, #tpu.memory_space<any>>
      %c9_i32 = arith.constant 9 : i32
      %c8_i32_77 = arith.constant 8 : i32
      %c0_i32_78 = arith.constant 0 : i32
      %113 = tpu.memref_slice %arg7[%c9_i32, %c8_i32_77, %c0_i32_78] : memref<10x25x128xf32, #tpu.memory_space<vmem>> -> memref<1x16x128xf32, #tpu.memory_space<vmem>>
      %114 = tpu.memref_slice %arg8[%c2_i32] : memref<3x!tpu.dma_semaphore, #tpu.memory_space<semaphore_mem>> -> memref<1x!tpu.dma_semaphore, #tpu.memory_space<semaphore_mem>>
      %115 = tpu.memref_squeeze %114 : memref<1x!tpu.dma_semaphore, #tpu.memory_space<semaphore_mem>> -> memref<!tpu.dma_semaphore, #tpu.memory_space<semaphore_mem>>
      tpu.wait_dma2 semaphore(%115 : memref<!tpu.dma_semaphore, #tpu.memory_space<semaphore_mem>>) src(%112 : memref<1x16x128xf32, #tpu.memory_space<any>>) dst(%113 : memref<1x16x128xf32, #tpu.memory_space<vmem>>)
    } else {
    }
    %cst_31 = arith.constant 0.000000e+00 : f32
    %33 = vector.broadcast %cst_31 : f32 to vector<8x16x128xf32>
    %c0_32 = arith.constant 0 : index
    %c7_33 = arith.constant 7 : index
    %c0_34 = arith.constant 0 : index
    %34 = vector.load %arg7[%c0_32, %c7_33, %c0_34] : memref<10x25x128xf32, #tpu.memory_space<vmem>>, vector<10x16x128xf32>
    %35 = vector.extract_strided_slice %34 {offsets = [0, 0, 0], sizes = [8, 16, 128], strides = [1, 1, 1]} : vector<10x16x128xf32> to vector<8x16x128xf32>
    %c0_35 = arith.constant 0 : index
    %c0_36 = arith.constant 0 : index
    %c0_37 = arith.constant 0 : index
    %36 = vector.load %arg4[%c0_35, %c0_36, %c0_37] : memref<3x3x128xf32, #tpu.memory_space<vmem>>, vector<1x1x128xf32>
    %37 = vector.shape_cast %36 : vector<1x1x128xf32> to vector<128xf32>
    %38 = vector.shape_cast %37 : vector<128xf32> to vector<1x1x128xf32>
    %39 = vector.broadcast %38 : vector<1x1x128xf32> to vector<8x16x128xf32>
    %40 = arith.mulf %35, %39 : vector<8x16x128xf32>
    %41 = arith.addf %33, %40 : vector<8x16x128xf32>
    %42 = vector.extract_strided_slice %34 {offsets = [1, 0, 0], sizes = [8, 16, 128], strides = [1, 1, 1]} : vector<10x16x128xf32> to vector<8x16x128xf32>
    %c1 = arith.constant 1 : index
    %c0_38 = arith.constant 0 : index
    %c0_39 = arith.constant 0 : index
    %43 = vector.load %arg4[%c1, %c0_38, %c0_39] : memref<3x3x128xf32, #tpu.memory_space<vmem>>, vector<1x1x128xf32>
    %44 = vector.shape_cast %43 : vector<1x1x128xf32> to vector<128xf32>
    %45 = vector.shape_cast %44 : vector<128xf32> to vector<1x1x128xf32>
    %46 = vector.broadcast %45 : vector<1x1x128xf32> to vector<8x16x128xf32>
    %47 = arith.mulf %42, %46 : vector<8x16x128xf32>
    %48 = arith.addf %41, %47 : vector<8x16x128xf32>
    %49 = vector.extract_strided_slice %34 {offsets = [2, 0, 0], sizes = [8, 16, 128], strides = [1, 1, 1]} : vector<10x16x128xf32> to vector<8x16x128xf32>
    %c2 = arith.constant 2 : index
    %c0_40 = arith.constant 0 : index
    %c0_41 = arith.constant 0 : index
    %50 = vector.load %arg4[%c2, %c0_40, %c0_41] : memref<3x3x128xf32, #tpu.memory_space<vmem>>, vector<1x1x128xf32>
    %51 = vector.shape_cast %50 : vector<1x1x128xf32> to vector<128xf32>
    %52 = vector.shape_cast %51 : vector<128xf32> to vector<1x1x128xf32>
    %53 = vector.broadcast %52 : vector<1x1x128xf32> to vector<8x16x128xf32>
    %54 = arith.mulf %49, %53 : vector<8x16x128xf32>
    %55 = arith.addf %48, %54 : vector<8x16x128xf32>
    %c0_42 = arith.constant 0 : index
    %c8 = arith.constant 8 : index
    %c0_43 = arith.constant 0 : index
    %56 = vector.load %arg7[%c0_42, %c8, %c0_43] : memref<10x25x128xf32, #tpu.memory_space<vmem>>, vector<10x16x128xf32>
    %57 = vector.extract_strided_slice %56 {offsets = [0, 0, 0], sizes = [8, 16, 128], strides = [1, 1, 1]} : vector<10x16x128xf32> to vector<8x16x128xf32>
    %c0_44 = arith.constant 0 : index
    %c1_45 = arith.constant 1 : index
    %c0_46 = arith.constant 0 : index
    %58 = vector.load %arg4[%c0_44, %c1_45, %c0_46] : memref<3x3x128xf32, #tpu.memory_space<vmem>>, vector<1x1x128xf32>
    %59 = vector.shape_cast %58 : vector<1x1x128xf32> to vector<128xf32>
    %60 = vector.shape_cast %59 : vector<128xf32> to vector<1x1x128xf32>
    %61 = vector.broadcast %60 : vector<1x1x128xf32> to vector<8x16x128xf32>
    %62 = arith.mulf %57, %61 : vector<8x16x128xf32>
    %63 = arith.addf %55, %62 : vector<8x16x128xf32>
    %64 = vector.extract_strided_slice %56 {offsets = [1, 0, 0], sizes = [8, 16, 128], strides = [1, 1, 1]} : vector<10x16x128xf32> to vector<8x16x128xf32>
    %c1_47 = arith.constant 1 : index
    %c1_48 = arith.constant 1 : index
    %c0_49 = arith.constant 0 : index
    %65 = vector.load %arg4[%c1_47, %c1_48, %c0_49] : memref<3x3x128xf32, #tpu.memory_space<vmem>>, vector<1x1x128xf32>
    %66 = vector.shape_cast %65 : vector<1x1x128xf32> to vector<128xf32>
    %67 = vector.shape_cast %66 : vector<128xf32> to vector<1x1x128xf32>
    %68 = vector.broadcast %67 : vector<1x1x128xf32> to vector<8x16x128xf32>
    %69 = arith.mulf %64, %68 : vector<8x16x128xf32>
    %70 = arith.addf %63, %69 : vector<8x16x128xf32>
    %71 = vector.extract_strided_slice %56 {offsets = [2, 0, 0], sizes = [8, 16, 128], strides = [1, 1, 1]} : vector<10x16x128xf32> to vector<8x16x128xf32>
    %c2_50 = arith.constant 2 : index
    %c1_51 = arith.constant 1 : index
    %c0_52 = arith.constant 0 : index
    %72 = vector.load %arg4[%c2_50, %c1_51, %c0_52] : memref<3x3x128xf32, #tpu.memory_space<vmem>>, vector<1x1x128xf32>
    %73 = vector.shape_cast %72 : vector<1x1x128xf32> to vector<128xf32>
    %74 = vector.shape_cast %73 : vector<128xf32> to vector<1x1x128xf32>
    %75 = vector.broadcast %74 : vector<1x1x128xf32> to vector<8x16x128xf32>
    %76 = arith.mulf %71, %75 : vector<8x16x128xf32>
    %77 = arith.addf %70, %76 : vector<8x16x128xf32>
    %c0_53 = arith.constant 0 : index
    %c9 = arith.constant 9 : index
    %c0_54 = arith.constant 0 : index
    %78 = vector.load %arg7[%c0_53, %c9, %c0_54] : memref<10x25x128xf32, #tpu.memory_space<vmem>>, vector<10x16x128xf32>
    %79 = vector.extract_strided_slice %78 {offsets = [0, 0, 0], sizes = [8, 16, 128], strides = [1, 1, 1]} : vector<10x16x128xf32> to vector<8x16x128xf32>
    %c0_55 = arith.constant 0 : index
    %c2_56 = arith.constant 2 : index
    %c0_57 = arith.constant 0 : index
    %80 = vector.load %arg4[%c0_55, %c2_56, %c0_57] : memref<3x3x128xf32, #tpu.memory_space<vmem>>, vector<1x1x128xf32>
    %81 = vector.shape_cast %80 : vector<1x1x128xf32> to vector<128xf32>
    %82 = vector.shape_cast %81 : vector<128xf32> to vector<1x1x128xf32>
    %83 = vector.broadcast %82 : vector<1x1x128xf32> to vector<8x16x128xf32>
    %84 = arith.mulf %79, %83 : vector<8x16x128xf32>
    %85 = arith.addf %77, %84 : vector<8x16x128xf32>
    %86 = vector.extract_strided_slice %78 {offsets = [1, 0, 0], sizes = [8, 16, 128], strides = [1, 1, 1]} : vector<10x16x128xf32> to vector<8x16x128xf32>
    %c1_58 = arith.constant 1 : index
    %c2_59 = arith.constant 2 : index
    %c0_60 = arith.constant 0 : index
    %87 = vector.load %arg4[%c1_58, %c2_59, %c0_60] : memref<3x3x128xf32, #tpu.memory_space<vmem>>, vector<1x1x128xf32>
    %88 = vector.shape_cast %87 : vector<1x1x128xf32> to vector<128xf32>
    %89 = vector.shape_cast %88 : vector<128xf32> to vector<1x1x128xf32>
    %90 = vector.broadcast %89 : vector<1x1x128xf32> to vector<8x16x128xf32>
    %91 = arith.mulf %86, %90 : vector<8x16x128xf32>
    %92 = arith.addf %85, %91 : vector<8x16x128xf32>
    %93 = vector.extract_strided_slice %78 {offsets = [2, 0, 0], sizes = [8, 16, 128], strides = [1, 1, 1]} : vector<10x16x128xf32> to vector<8x16x128xf32>
    %c2_61 = arith.constant 2 : index
    %c2_62 = arith.constant 2 : index
    %c0_63 = arith.constant 0 : index
    %94 = vector.load %arg4[%c2_61, %c2_62, %c0_63] : memref<3x3x128xf32, #tpu.memory_space<vmem>>, vector<1x1x128xf32>
    %95 = vector.shape_cast %94 : vector<1x1x128xf32> to vector<128xf32>
    %96 = vector.shape_cast %95 : vector<128xf32> to vector<1x1x128xf32>
    %97 = vector.broadcast %96 : vector<1x1x128xf32> to vector<8x16x128xf32>
    %98 = arith.mulf %93, %97 : vector<8x16x128xf32>
    %99 = arith.addf %92, %98 : vector<8x16x128xf32>
    %cst_64 = arith.constant 0.000000e+00 : f32
    %100 = vector.broadcast %cst_64 : f32 to vector<8x16x128xf32>
    %101 = arith.maximumf %99, %100 : vector<8x16x128xf32>
    %102 = vector.shape_cast %101 : vector<8x16x128xf32> to vector<128x128xf32>
    %cst_65 = arith.constant dense<0.000000e+00> : vector<128x128xf32>
    %103 = tpu.matmul %102, %21, %cst_65 {dimension_numbers = #tpu.dot_dimension_numbers<[1], [0], [0], [1], [0, 0, 1, 1], [], []>} : vector<128x128xf32>, vector<128x128xf32>, vector<128x128xf32> -> vector<128x128xf32>
    %104 = vector.shape_cast %103 : vector<128x128xf32> to vector<8x16x128xf32>
    %c0_66 = arith.constant 0 : index
    %c0_67 = arith.constant 0 : index
    %c0_68 = arith.constant 0 : index
    %c0_69 = arith.constant 0 : index
    %105 = vector.load %arg2[%c0_66, %c0_67, %c0_68, %c0_69] : memref<1x8x16x128xf32, #tpu.memory_space<vmem>>, vector<1x8x16x128xf32>
    %106 = vector.shape_cast %105 : vector<1x8x16x128xf32> to vector<8x16x128xf32>
    %107 = arith.addf %104, %106 : vector<8x16x128xf32>
    %c0_70 = arith.constant 0 : index
    %c0_71 = arith.constant 0 : index
    %c0_72 = arith.constant 0 : index
    %c0_73 = arith.constant 0 : index
    %108 = vector.load %arg6[%c0_70, %c0_71, %c0_72, %c0_73] : memref<1x8x16x128xf32, #tpu.memory_space<vmem>>, vector<1x8x16x128xf32>
    %109 = vector.shape_cast %108 : vector<1x8x16x128xf32> to vector<8x16x128xf32>
    %110 = vector.shape_cast %107 : vector<8x16x128xf32> to vector<1x8x16x128xf32>
    tpu.vector_store %arg6[%c0_70, %c0_71, %c0_72, %c0_73], %110 {strides = array<i32>} : memref<1x8x16x128xf32, #tpu.memory_space<vmem>>, vector<1x8x16x128xf32>,
    return
  }
  func.func @transform_0(%arg0: i32, %arg1: i32) -> (i32, i32, i32, i32) {
    %c0_i32 = arith.constant 0 : i32
    %c0_i32_0 = arith.constant 0 : i32
    %c0_i32_1 = arith.constant 0 : i32
    return %arg0, %arg1, %c0_i32, %c0_i32_0 : i32, i32, i32, i32
  }
  func.func @transform_2(%arg0: i32, %arg1: i32) -> (i32, i32, i32) {
    %c0_i32 = arith.constant 0 : i32
    %c0_i32_0 = arith.constant 0 : i32
    %c0_i32_1 = arith.constant 0 : i32
    %c0_i32_2 = arith.constant 0 : i32
    return %c0_i32, %c0_i32_0, %c0_i32_1 : i32, i32, i32
  }
  func.func @transform_3(%arg0: i32, %arg1: i32) -> (i32, i32) {
    %c0_i32 = arith.constant 0 : i32
    %c0_i32_0 = arith.constant 0 : i32
    %c0_i32_1 = arith.constant 0 : i32
    return %c0_i32, %c0_i32_0 : i32, i32
  }
  func.func @transform_4(%arg0: i32, %arg1: i32) -> (i32, i32, i32, i32) {
    %c0_i32 = arith.constant 0 : i32
    %c0_i32_0 = arith.constant 0 : i32
    %c0_i32_1 = arith.constant 0 : i32
    return %arg0, %arg1, %c0_i32, %c0_i32_0 : i32, i32, i32, i32
  }
}

</mosaic_0001>

<bundles_post_ra>
// kernel: tpu_custom_call.1
= control target key start
LH: loop header
LB: loop body
LE: loop exit
PB: predicated region body
PF: predicated region fallthrough
CT: control target
= control target key end

     0   :  { %s2649_s0 = inlined_call_operand.hbm [shape: f32[2,16,16,128], index: 0, kind: input, shape index: {}]   ;;  %s2650_s1 = inlined_call_operand.hbm [shape: f32[2,16,16,128], index: 1, kind: input, shape index: {}]   ;;  %s2651_s2 = inlined_call_operand.hbm [shape: f32[3,3,128], index: 2, kind: input, shape index: {}]   ;;  %s2652_s3 = inlined_call_operand.hbm [shape: f32[128,128], index: 3, kind: input, shape index: {}]   ;;  %s2653_s4 = inlined_call_operand.hbm [shape: f32[2,16,16,128], index: 4, kind: output, shape index: {}]  }
   0x1   :  { %2677 = sst [smem:[#allocation36_spill]] %s2651_s2 }
   0x2   :  { %2678 = sst [smem:[#allocation37_spill]] %s2652_s3 }
   0x3   :  { %2679 = sst [smem:[#allocation38_spill]] %s2653_s4 }
   0x4   :  { %9 = vsyncpa [#allocation5], 0 }
   0x5   :  { %11 = vsyncpa [#allocation5 + $0x1], 0 }
   0x6   :  { %12 = vsyncpa [#allocation8], 0 }
   0x7   :  { %13 = vsyncpa [#allocation6], 0 }
   0x8   :  { %15 = vsyncpa [#allocation6 + $0x1], 0  ;;  %s1824_s15 = smov 0   ;;  %s1826_s16 = smov 0  }
   0x9   :  { %s1828_s17 = smov 0   ;;  %s1830_s18 = smov 0  }
   0xa   :  { %s1832_s19 = smov 0   ;;  %s1834_s20 = smov 0  }
   0xb   :  { %s1836_s21 = smov 0   ;;  %s1838_s22 = smov 0  }
   0xc LB: > { %2680 = sst [smem:[#allocation24_spill]] %s1753_s15  ;;  %s1217_s23 = sadd.s32 4294967295, %s1781_s22   ;;  %s1781_s22 = sphi %s1838_s22, %s21_s22   ;;  %s1777_s21 = sphi %s1836_s21, %s2735_s21   ;;  %s1773_s20 = sphi %s1834_s20, %s2734_s20   ;;  %s1769_s19 = sphi %s1832_s19, %s2733_s19   ;;  %s1765_s18 = sphi %s1830_s18, %s2732_s18   ;;  %s1761_s17 = sphi %s1828_s17, %s2731_s17   ;;  %s1757_s16 = sphi %s1826_s16, %s2730_s16   ;;  %s1753_s15 = sphi %s1824_s15, %s2729_s15  }
   0xd   : > { %s1218_s24 = sadd.s32 4294967294, %s1781_s22   ;;  %p55_p0 = scmp.ne.s32.totalorder %s1757_s16, %s1753_s15 }
   0xe   : > { %p1868_p1 = scmp.eq.s32.totalorder %s1217_s23, 0  ;;  %p1872_p2 = scmp.eq.s32.totalorder %s1217_s23, 3 }
   0xf   : > { %p129_p3 = scmp.eq.s32.totalorder %s1218_s24, 3  ;;  %p1219_p5 = scmp.ge.s32.totalorder %s1781_s22, 1 }
  0x10   : > { %s2681_s25 = scalar_select %p1868_p1, 1, 0 }
  0x11   : > { %s2682_s26 = scalar_select %p1872_p2, 1, 0 }
  0x12   : > { %p1878_p4 = por %p1868_p1, %p55_p0  ;;  %p1883_p6 = por %p129_p3, %p55_p0 }
  0x13   : > { %p136_p7 = scmp.lt.s32.totalorder %s1781_s22, 5  ;;  %s1783_s30 = smov [#allocation7]  }
  0x14   : > { %s2683_s27 = scalar_select %p1878_p4, 1, 0 }
  0x15   : > { %s2684_s28 = scalar_select %p1883_p6, 1, 0 }
  0x16   : > { %p1888_p8 = pnand %p1219_p5, %p136_p7  ;;  %s148_s5 = sshll.u32 %s1783_s30, 4  ;;  %s149_s5 = int_to_ptr.vmem [resolvable:$true] %s148_s5 }
  0x17   : > { %2685 = sst [smem:[#allocation25_spill]] %s2684_s28  ;;  %s1784_s7 = smov [#allocation9]  }
  0x18   : > { %s2686_s29 = scalar_select %p1888_p8, 1, 0 }
  0x19   : > { %p1424_p9 = pneg %p1888_p8  ;;  %s161_s8 = sshll.u32 %s1784_s7, 4  ;;  %s1900_s8 = int_to_ptr.vmem [resolvable:$true] %s161_s8 }
  0x1a   : > { %s2688_s2 = sld [smem:[#allocation36_spill]] }
  0x1b   : > { %p1896_p10 = pnand %p1424_p9, %p1868_p1 }
  0x1d   : > { %p1528_p12 = pneg %p1896_p10 }
  0x20   : > { %s1526_s11 = scalar_lea.hbm %s2688_s2, 192 }
  0x21   : > { %p1527_p11 = scmp.ne.s32.totalorder %s2688_s2, %s1526_s11  ;;  %p1533_p3 = scmp.lt.u32.totalorder %s1526_s11, %s2688_s2 }
  0x23   : > { %p1529_p13 = pnand %p1528_p12, %p1527_p11 }
  0x25   : > { %p1530_p0 = pneg %p1529_p13 }
  0x27   : > { %p1535_p5 = pnand %p1533_p3, %p1530_p0 }
  0x29   : > { %1538 = shalt.err (!%p1535_p5)
}
  0x2a   : > { %s1539_s24 = scalar_lea.vmem %s149_s5, 192  ;;  %p1547_p1 = scmp.lt.s32.totalorder %s149_s5, %s149_s5 }
  0x2b   : > { %p1540_p7 = scmp.ne.s32.totalorder %s149_s5, %s1539_s24  ;;  %p1548_p4 = scmp.lt.s32.totalorder %s1539_s24, %s1539_s24 }
  0x2d   : > { %p1542_p9 = pnand %p1540_p7, %p1528_p12  ;;  %p1549_p8 = por %p1548_p4, %p1547_p1 }
  0x2f   : > { %p1543_p6 = pneg %p1542_p9 }
  0x31   : > { %p1550_p2 = pnand %p1549_p8, %p1543_p6 }
  0x33   : > { %1553 = shalt.err (!%p1550_p2)
}
  0x34   : > { %s1785_s30 = smov 64   ;;  %s1786_s7 = smov 4  }
  0x35   : > { %1427 = dma.hbm_to_vmem [thread:$0]  (!%p1896_p10), %s2688_s2, 192, %s149_s5, [#allocation8], %s1785_s30, %s1785_s30, %s1786_s7  }
  0x36   : > { %s2689_s3 = sld [smem:[#allocation37_spill]] }
  0x3c   : > { %s1554_s13 = scalar_lea.hbm %s2689_s3, 2048 }
  0x3d   : > { %p1555_p11 = scmp.ne.s32.totalorder %s2689_s3, %s1554_s13  ;;  %p1561_p4 = scmp.lt.u32.totalorder %s1554_s13, %s2689_s3 }
  0x3f   : > { %p1557_p1 = pnand %p1555_p11, %p1528_p12 }
  0x41   : > { %p1558_p2 = pneg %p1557_p1 }
  0x43   : > { %p1563_p6 = pnand %p1561_p4, %p1558_p2 }
  0x45   : > { %1566 = shalt.err (!%p1563_p6)
}
  0x46   : > { %s1567_s5 = scalar_lea.vmem %s1900_s8, 2048  ;;  %p1575_p3 = scmp.lt.s32.totalorder %s1900_s8, %s1900_s8 }
  0x47   : > { %p1568_p8 = scmp.ne.s32.totalorder %s1900_s8, %s1567_s5  ;;  %p1576_p5 = scmp.lt.s32.totalorder %s1567_s5, %s1567_s5 }
  0x49   : > { %p1570_p13 = pnand %p1568_p8, %p1528_p12  ;;  %p1577_p7 = por %p1576_p5, %p1575_p3 }
  0x4b   : > { %p1571_p0 = pneg %p1570_p13 }
  0x4d   : > { %p1578_p9 = pnand %p1577_p7, %p1571_p0 }
  0x4f   : > { %1581 = shalt.err (!%p1578_p9)
}
  0x50   : > { %s2659_s28 = smov 128   ;;  %s2660_s30 = smov 8  }
  0x51   : > { %1430 = dma.hbm_to_vmem [thread:$0]  (!%p1896_p10), %s2689_s3, 2048, %s1900_s8, [#allocation8], %s2659_s28, %s2659_s28, %s2660_s30  }
  0x52   : > { %s30_s10 = sadd.s32 1, %s1773_s20  ;;  %s33_s11 = sadd.s32 1, %s1777_s21 }
  0x53   : > { %p31_p12 = scmp.ge.s32.totalorder %s30_s10, 2  ;;  %s42_s12 = sadd.s32 1, %s1761_s17 }
  0x54   : > { %p49_p11 = scmp.ne.s32.totalorder %s1761_s17, %s1757_s16  ;;  %p50_p1 = scmp.eq.s32.totalorder %s1781_s22, 0 }
  0x55   : > { %s2737_s10 = smov (%p31_p12, %s30_s10), 0  ;;  %s2739_s11 = smov (!%p31_p12, %s33_s11), %s1777_s21 }
  0x56   : > { %2690 = sst [smem:[#allocation26_spill]] %s2737_s10  ;;  %s38_s6 = ssub.s32 %s1773_s20, %s2737_s10 }
  0x57   : > { %p1963_p2 = por %p50_p1, %p49_p11  ;;  %p35_p10 = scmp.ge.s32.totalorder %s2739_s11, 2 }
  0x58   : > { %p2692_p4 = scmp.ne.s32.totalorder %s2682_s26, 0  ;;  %p1441_p8 = scmp.lt.s32.totalorder %s1781_s22, 4 }
  0x59   : > { %s175_s14 = sand.u32 1, %s1761_s17   ;;  %s2741_s11 = smov (%p35_p10, %s2739_s11), 0 }
  0x5a   : > { %p1969_p6 = por %p2692_p4, %p49_p11  ;;  %s1223_s23 = sshll.u32 %s175_s14, 7 }
  0x5b   : > { %s37_s24 = ssub.s32 %s1777_s21, %s2741_s11  ;;  %s1266_s7 = sshll.u32 %s1773_s20, 4 }
  0x5c   : > { %s2693_s8 = scalar_select %p1969_p6, 1, 0 }
  0x5d   : > { %s39_s5 = sor.u32 %s38_s6, %s37_s24  ;;  %s1226_s9 = sshll.u32 %s1777_s21, 5 }
  0x5e   : > { %p40_p13 = scmp.eq.s32.totalorder %s39_s5, 0  ;;  %s186_s28 = sadd.s32 %s1266_s7, %s1226_s9 }
  0x5f   : > { %s179_s30 = scalar_lea.vmem [#allocation4], %s1223_s23  ;;  %s1227_s3 = sshll.u32 %s186_s28, 7 }
  0x60   : > { %s189_s26 = sshll.u32 %s179_s30, 4  ;;  %s1989_s4 = scalar_lea.hbm %s2649_s0, %s1227_s3  ;;  %s1984_s26 = int_to_ptr.vmem [resolvable:$true] %s189_s26 }
  0x61   : > { %s1982_s2 = scalar_select %p40_p13, %s1761_s17, %s42_s12  }
  0x62   : > { %p1995_p0 = pnand %p1441_p8, %p1963_p2  ;;  %s1999_s28 = scalar_lea.sflag [#allocation5], %s175_s14 }
  0x63   : > { %s1582_s30 = scalar_lea.hbm %s1989_s4, 2048  ;;  %s1587_s10 = scalar_lea.hbm %s2649_s0, 8192 }
  0x64   : > { %p1583_p3 = scmp.ne.s32.totalorder %s1989_s4, %s1582_s30  ;;  %p1584_p5 = pneg %p1995_p0 }
  0x65   : > { %p1588_p12 = scmp.lt.u32.totalorder %s1989_s4, %s2649_s0  ;;  %p1589_p11 = scmp.lt.u32.totalorder %s1587_s10, %s1582_s30 }
  0x66   : > { %p1585_p7 = pnand %p1584_p5, %p1583_p3  ;;  %p1591_p2 = scmp.lt.u32.totalorder %s1582_s30, %s1989_s4 }
  0x67   : > { %p1590_p1 = por %p1589_p11, %p1588_p12 }
  0x68   : > { %p1586_p9 = pneg %p1585_p7 }
  0x69   : > { %p1592_p10 = por %p1591_p2, %p1590_p1 }
  0x6b   : > { %p1593_p4 = pnand %p1592_p10, %p1586_p9 }
  0x6d   : > { %1596 = shalt.err (!%p1593_p4)
}
  0x6e   : > { %s1597_s14 = scalar_lea.vmem %s1984_s26, 2048  ;;  %s1789_s23 = smov [#allocation4]  }
  0x6f   : > { %p1598_p8 = scmp.ne.s32.totalorder %s1984_s26, %s1597_s14  ;;  %s1602_s24 = sshll.u32 %s1789_s23, 4  ;;  %s1603_s24 = int_to_ptr.vmem [resolvable:$false] %s1602_s24 }
  0x70   : > { %s1604_s5 = scalar_lea.vmem %s1603_s24, 4096  ;;  %p1605_p7 = scmp.lt.s32.totalorder %s1984_s26, %s1603_s24 }
  0x71   : > { %p1600_p13 = pnand %p1598_p8, %p1584_p5  ;;  %p1606_p12 = scmp.lt.s32.totalorder %s1604_s5, %s1597_s14 }
  0x73   : > { %p1601_p3 = pneg %p1600_p13  ;;  %p1607_p11 = por %p1606_p12, %p1605_p7 }
  0x75   : > { %p1608_p1 = pnand %p1607_p11, %p1601_p3 }
  0x77   : > { %1611 = shalt.err (!%p1608_p1)
}
  0x78   : > { %s2695_s7 = smov 8   ;;  %s2696_s9 = smov 128  }
  0x79   : > { %1434 = dma.hbm_to_vmem [thread:$0]  (!%p1995_p0), %s1989_s4, 2048, %s1984_s26, %s1999_s28, %s2696_s9, %s2696_s9, %s2695_s7  }
  0x7a   : > { %p2697_p5 = scmp.ne.s32.totalorder %s2686_s29, 0 }
  0x7c   : > { %201 = sbr.rel (%p2697_p5) target bundleno = 555 (0x22b), region = 32 }
  0x83   : > { %s2033_s30 = sand.u32 1, %s1757_s16   ;;  %p2698_p9 = scmp.ne.s32.totalorder %s2683_s27, 0 }
  0x84   : > { %s1229_s3 = sshll.u32 %s2033_s30, 7  ;;  %s204_s15 = scalar_lea.sflag [#allocation5], %s2033_s30 }
  0x85   : > { %s2039_s6 = scalar_lea.vmem [#allocation4], %s1229_s3 }
  0x86   : > { %1730 = dma.done.wait (%p2698_p9), %s204_s15, 2048  }
  0x87   : > { %1732 = vsyncadd (%p2698_p9), %s204_s15, 4294965248  ;;  %p2699_p0 = scmp.ne.s32.totalorder %s2681_s25, 0 }
  0x89   : > { %1734 = dma.done.wait (%p2699_p0), [#allocation8], 2240  }
  0x8a   : > { %1736 = vsyncadd (%p2699_p0), [#allocation8], 4294965056  ;;  %v287_v0 = vld [vmem:[%s2039_s6] sm:$0xff]  ;;  %v289_v1 = vld [vmem:[%s2039_s6 + $0x8] sm:$0xff]  ;;  %s2067_s4 = scalar_lea.vmem [#allocation10], %s1229_s3 }
  0x8b   : > { %v291_v2 = vld [vmem:[%s2039_s6 + $0x10] sm:$0xff]  ;;  %288 = vst [vmem:[#allocation2 + $0x28] sm:$0xff] %v287_v0  ;;  %290 = vst [vmem:[#allocation2 + $0x30] sm:$0xff] %v289_v1  ;;  %v293_v3 = vld [vmem:[%s2039_s6 + $0x18] sm:$0xff] }
  0x8c   : > { %292 = vst [vmem:[#allocation2 + $0x48] sm:$0xff] %v291_v2  ;;  %v295_v4 = vld [vmem:[%s2039_s6 + $0x20] sm:$0xff]  ;;  %v297_v5 = vld [vmem:[%s2039_s6 + $0x28] sm:$0xff]  ;;  %294 = vst [vmem:[#allocation2 + $0x50] sm:$0xff] %v293_v3 }
  0x8d   : > { %296 = vst [vmem:[#allocation2 + $0x68] sm:$0xff] %v295_v4  ;;  %298 = vst [vmem:[#allocation2 + $0x70] sm:$0xff] %v297_v5  ;;  %v299_v6 = vld [vmem:[%s2039_s6 + $0x30] sm:$0xff]  ;;  %v301_v7 = vld [vmem:[%s2039_s6 + $0x38] sm:$0xff] }
  0x8e   : > { %v303_v8 = vld [vmem:[%s2039_s6 + $0x40] sm:$0xff]  ;;  %300 = vst [vmem:[#allocation2 + $0x88] sm:$0xff] %v299_v6  ;;  %302 = vst [vmem:[#allocation2 + $0x90] sm:$0xff] %v301_v7  ;;  %v305_v9 = vld [vmem:[%s2039_s6 + $0x48] sm:$0xff] }
  0x8f   : > { %304 = vst [vmem:[#allocation2 + $0xa8] sm:$0xff] %v303_v8  ;;  %v307_v10 = vld [vmem:[%s2039_s6 + $0x50] sm:$0xff]  ;;  %v309_v11 = vld [vmem:[%s2039_s6 + $0x58] sm:$0xff]  ;;  %306 = vst [vmem:[#allocation2 + $0xb0] sm:$0xff] %v305_v9 }
  0x90   : > { %308 = vst [vmem:[#allocation2 + $0xc8] sm:$0xff] %v307_v10  ;;  %310 = vst [vmem:[#allocation2 + $0xd0] sm:$0xff] %v309_v11  ;;  %v311_v12 = vld [vmem:[%s2039_s6 + $0x60] sm:$0xff]  ;;  %v313_v13 = vld [vmem:[%s2039_s6 + $0x68] sm:$0xff] }
  0x91   : > { %v315_v14 = vld [vmem:[%s2039_s6 + $0x70] sm:$0xff]  ;;  %312 = vst [vmem:[#allocation2 + $0xe8] sm:$0xff] %v311_v12  ;;  %314 = vst [vmem:[#allocation2 + $0xf0] sm:$0xff] %v313_v13  ;;  %v317_v15 = vld [vmem:[%s2039_s6 + $0x78] sm:$0xff] }
  0x92   : > { %316 = vst [vmem:[#allocation2 + $0x108] sm:$0xff] %v315_v14  ;;  %318 = vst [vmem:[#allocation2 + $0x110] sm:$0xff] %v317_v15 }
  0x93   : > { %326 = vsyncadd [#allocation3], 2048  ;;  %p2666_p2 = scmp.gt.s32.totalorder %s1765_s18, 0  ;;  %s1234_s25 = sshll.u32 %s1765_s18, 3 }
  0x94   : > { %s1237_s27 = sshll.u32 %s1769_s19, 8  ;;  %s1235_s29 = sadd.s32 4294967295, %s1234_s25 }
  0x95   : > { %s1236_s26 = sshll.u32 %s1235_s29, 4  ;;  %s1790_s28 = smov [#allocation2 + $0x8]  }
  0x96   : > { %s347_s10 = sshll.u32 %s1790_s28, 4  ;;  %s335_s12 = sadd.s32 %s1237_s27, %s1236_s26  ;;  %s2074_s10 = int_to_ptr.vmem [resolvable:$true] %s347_s10 }
  0x97   : > { %s1238_s13 = sshll.u32 %s335_s12, 4  ;;  %p1445_p10 = scmp.lt.s32.totalorder %s1765_s18, 1 }
  0x98   : > { %s337_s24 = scalar_lea.hbm %s2650_s1, %s1238_s13  ;;  %s2665_s3 = scalar_lea.hbm %s2650_s1, 8192 }
  0x99   : > { %s1612_s5 = scalar_lea.hbm %s337_s24, 256  ;;  %p1617_p3 = scmp.lt.u32.totalorder %s337_s24, %s2650_s1 }
  0x9a   : > { %p1613_p4 = scmp.ne.s32.totalorder %s337_s24, %s1612_s5  ;;  %p1618_p7 = scmp.lt.u32.totalorder %s2665_s3, %s1612_s5 }
  0x9b   : > { %p1620_p11 = scmp.lt.u32.totalorder %s1612_s5, %s337_s24 }
  0x9c   : > { %p1614_p8 = pnand %p1613_p4, %p2666_p2  ;;  %p1619_p12 = por %p1618_p7, %p1617_p3 }
  0x9e   : > { %p1615_p13 = pneg %p1614_p8  ;;  %p1621_p1 = por %p1620_p11, %p1619_p12 }
  0xa0   : > { %p1622_p5 = pnand %p1621_p1, %p1615_p13 }
  0xa2   : > { %1625 = shalt.err (!%p1622_p5)  }
  0xa3   : > { %s1626_s28 = scalar_lea.vmem %s2074_s10, 256  ;;  %s1791_s12 = smov [#allocation2]  }
  0xa4   : > { %p1627_p9 = scmp.ne.s32.totalorder %s2074_s10, %s1626_s28  ;;  %s1630_s13 = sshll.u32 %s1791_s12, 4  ;;  %s2096_s13 = int_to_ptr.vmem [resolvable:$false] %s1630_s13 }
  0xa5   : > { %s2664_s14 = scalar_lea.vmem %s2096_s13, 5120  ;;  %p1633_p8 = scmp.lt.s32.totalorder %s2074_s10, %s2096_s13 }
  0xa6   : > { %p1628_p0 = pnand %p1627_p9, %p2666_p2  ;;  %p1634_p13 = scmp.lt.s32.totalorder %s2664_s14, %s1626_s28 }
  0xa8   : > { %p1629_p4 = pneg %p1628_p0  ;;  %p1635_p3 = por %p1634_p13, %p1633_p8 }
  0xaa   : > { %p1636_p7 = pnand %p1635_p3, %p1629_p4 }
  0xac   : > { %1639 = shalt.err (!%p1636_p7)  }
  0xad   : > { %1415 = dma.hbm_to_vmem [thread:$0]  (%p2666_p2), %s337_s24, 256, %s2074_s10, [#allocation3 + $0x1] }
  0xae   : > { %s1240_s23 = sshll.u32 %s1765_s18, 7  ;;  %s1792_s7 = smov [#allocation2 + $0x128]  }
  0xaf   : > { %s1141_s5 = sadd.s32 %s1240_s23, %s1237_s27  ;;  %s371_s9 = sshll.u32 %s1792_s7, 4  ;;  %s372_s9 = int_to_ptr.vmem [resolvable:$true] %s371_s9 }
  0xb0   : > { %s1242_s15 = sshll.u32 %s1141_s5, 4  ;;  %s2700_s24 = scalar_lea.hbm %s2650_s1, 8192 }
  0xb1   : > { %s1143_s26 = scalar_lea.hbm %s2650_s1, %s1242_s15 }
  0xb2   : > { %s1144_s28 = scalar_lea.hbm %s1143_s26, 2048  ;;  %s1668_s12 = scalar_lea.hbm %s1143_s26, 2304 }
  0xb3   : > { %p1641_p12 = scmp.ne.s32.totalorder %s1144_s28, %s1668_s12  ;;  %p1645_p5 = scmp.lt.u32.totalorder %s1144_s28, %s2650_s1 }
  0xb4   : > { %p1646_p9 = scmp.lt.u32.totalorder %s2700_s24, %s1668_s12  ;;  %p1648_p4 = scmp.lt.u32.totalorder %s1668_s12, %s1144_s28 }
  0xb5   : > { %p1642_p11 = pnand %p1641_p12, %p1445_p10 }
  0xb6   : > { %p1647_p0 = por %p1646_p9, %p1645_p5 }
  0xb7   : > { %p1643_p1 = pneg %p1642_p11 }
  0xb8   : > { %p1649_p8 = por %p1648_p4, %p1647_p0 }
  0xba   : > { %p1650_p13 = pnand %p1649_p8, %p1643_p1 }
  0xbc   : > { %1653 = shalt.err (!%p1650_p13)  }
  0xbd   : > { %s1654_s23 = scalar_lea.vmem %s372_s9, 256  ;;  %p1661_p11 = scmp.lt.s32.totalorder %s372_s9, %s2096_s13 }
  0xbe   : > { %p1655_p3 = scmp.ne.s32.totalorder %s372_s9, %s1654_s23  ;;  %s2701_s3 = scalar_lea.vmem %s2096_s13, 5120 }
  0xbf   : > { %p1662_p2 = scmp.lt.s32.totalorder %s2701_s3, %s1654_s23 }
  0xc0   : > { %p1656_p7 = pnand %p1655_p3, %p1445_p10 }
  0xc1   : > { %p1663_p6 = por %p1662_p2, %p1661_p11 }
  0xc2   : > { %p1657_p12 = pneg %p1656_p7 }
  0xc4   : > { %p1664_p5 = pnand %p1663_p6, %p1657_p12 }
  0xc6   : > { %1667 = shalt.err (!%p1664_p5)  }
  0xc7   : > { %1417 = dma.hbm_to_vmem [thread:$0]  (%p1445_p10), %s1144_s28, 256, %s372_s9, [#allocation3 + $0x2]  ;;  %v1793_v16 = vmov 0.0  }
  0xc8   : > { %375 = vst [vmem:[#allocation2 + $0x7] sm:$0x1] %v1793_v16  ;;  %376 = vst [vmem:[#allocation2 + $0x27] sm:$0x1] %v1793_v16  ;;  %p1243_p6 = scmp.ne.s32.totalorder %s1765_s18, 0 }
  0xc9   : > { %377 = vst [vmem:[#allocation2 + $0x47] sm:$0x1] %v1793_v16  ;;  %378 = vst [vmem:[#allocation2 + $0x67] sm:$0x1] %v1793_v16  ;;  %v1794_v17 = vmov (!%p1243_p6), 0.0  }
  0xca   : > { %379 = vst [vmem:[#allocation2 + $0x87] sm:$0x1] %v1793_v16  ;;  %380 = vst [vmem:[#allocation2 + $0xa7] sm:$0x1] %v1793_v16 }
  0xcb   : > { %381 = vst [vmem:[#allocation2 + $0xc7] sm:$0x1] %v1793_v16  ;;  %382 = vst [vmem:[#allocation2 + $0xe7] sm:$0x1] %v1793_v16  ;;  %398 = sbr.rel (%p1243_p6) target bundleno = 212 (0xd4), region = 98 }
  0xcc   : > { %383 = vst [vmem:[#allocation2 + $0x107] sm:$0x1] %v1793_v16  ;;  %384 = vst [vmem:[#allocation2 + $0x127] sm:$0x1] %v1793_v16 }
  0xcd   : > { %385 = vst [vmem:[#allocation2 + $0x18] sm:$0x1] %v1793_v16  ;;  %386 = vst [vmem:[#allocation2 + $0x38] sm:$0x1] %v1793_v16 }
  0xce   : > { %387 = vst [vmem:[#allocation2 + $0x58] sm:$0x1] %v1793_v16  ;;  %388 = vst [vmem:[#allocation2 + $0x78] sm:$0x1] %v1793_v16 }
  0xcf   : > { %389 = vst [vmem:[#allocation2 + $0x98] sm:$0x1] %v1793_v16  ;;  %390 = vst [vmem:[#allocation2 + $0xb8] sm:$0x1] %v1793_v16 }
  0xd0   : > { %391 = vst [vmem:[#allocation2 + $0xd8] sm:$0x1] %v1793_v16  ;;  %392 = vst [vmem:[#allocation2 + $0xf8] sm:$0x1] %v1793_v16 }
  0xd1   : > { %393 = vst [vmem:[#allocation2 + $0x118] sm:$0x1] %v1793_v16  ;;  %394 = vst [vmem:[#allocation2 + $0x138] sm:$0x1] %v1793_v16 }
  0xd2   : > { %399 = vst [vmem:[#allocation2] sm:$0xff] %v1794_v17  ;;  %400 = vst [vmem:[#allocation2 + $0x8] sm:$0xff] %v1794_v17 }
  0xd3   : > { %401 = vst [vmem:[#allocation2 + $0x10] sm:$0xff] %v1794_v17  ;;  %402 = vst [vmem:[#allocation2 + $0x18] sm:$0x1] %v1794_v17 }
  0xd4 PF: > { %p1244_p2 = scmp.ne.s32.totalorder %s1765_s18, 1 }
  0xd5   : > { %v1795_v18 = vmov (!%p1244_p2), 0.0  }
  0xd6   : > { %406 = sbr.rel (%p1244_p2) target bundleno = 221 (0xdd), region = 102  ;;  %408 = vst [vmem:[#allocation2 + $0x120] sm:$0xff] (!%p1244_p2), %v1795_v18  ;;  %409 = vst [vmem:[#allocation2 + $0x128] sm:$0xff] (!%p1244_p2), %v1795_v18 }
  0xd7   : > { %410 = vst [vmem:[#allocation2 + $0x130] sm:$0xff] (!%p1244_p2), %v1795_v18  ;;  %411 = vst [vmem:[#allocation2 + $0x138] sm:$0x1] (!%p1244_p2), %v1795_v18 }
  0xdd PF: > { %v412_v19 = vld [vmem:[#allocation9] sm:$0xff]  ;;  %v413_v20 = vld [vmem:[#allocation9 + $0x8] sm:$0xff]  ;;  %v414_v21 = vld [vmem:[#allocation9 + $0x10] sm:$0xff] }
  0xde   : > { %v415_v22 = vld [vmem:[#allocation9 + $0x18] sm:$0xff]  ;;  %v416_v23 = vld [vmem:[#allocation9 + $0x20] sm:$0xff]  ;;  %v417_v24 = vld [vmem:[#allocation9 + $0x28] sm:$0xff] }
  0xdf   : > { %v418_v25 = vld [vmem:[#allocation9 + $0x30] sm:$0xff]  ;;  %v419_v26 = vld [vmem:[#allocation9 + $0x38] sm:$0xff]  ;;  %v420_v27 = vld [vmem:[#allocation9 + $0x40] sm:$0xff] }
  0xe0   : > { %v421_v28 = vld [vmem:[#allocation9 + $0x48] sm:$0xff]  ;;  %v422_v29 = vld [vmem:[#allocation9 + $0x50] sm:$0xff]  ;;  %v423_v30 = vld [vmem:[#allocation9 + $0x58] sm:$0xff] }
  0xe1   : > { %v424_v31 = vld [vmem:[#allocation9 + $0x60] sm:$0xff]  ;;  %v425_v32 = vld [vmem:[#allocation9 + $0x68] sm:$0xff]  ;;  %v426_v33 = vld [vmem:[#allocation9 + $0x70] sm:$0xff] }
  0xe2   : > { %v427_v34 = vld [vmem:[#allocation9 + $0x78] sm:$0xff] }
  0xe3   : > { %1737 = dma.done.wait [#allocation3], 2048 }
  0xe4   : > { %1738 = vsyncadd [#allocation3], 4294965248  ;;  %p2702_p1 = scmp.gt.s32.totalorder %s1765_s18, 0 }
  0xe6   : > { %1740 = dma.done.wait (%p2702_p1), [#allocation3 + $0x1], 256  ;;  %p2703_p9 = pmov %p2702_p1 }
  0xe7   : > { %v1356_v35 = vpack.c.bf16 %v413_v20, %v412_v19 }
  0xe8   : > { %1742 = vsyncadd (%p2703_p9), [#allocation3 + $0x1], 4294967040 }
  0xe9   : > { %1744 = dma.done.wait (%p1445_p10), [#allocation3 + $0x2], 256 }
  0xea   : > { %1746 = vsyncadd (%p1445_p10), [#allocation3 + $0x2], 4294967040  ;;  %v1360_v36 = vpack.c.bf16 %v415_v22, %v414_v21  ;;  %1357 = vmatprep.subr.bf16.mxu0 %v1356_v35  ;;  %1388 = vmatprep.subr.bf16.mxu1 %v1356_v35  ;;  %v1364_v37 = vpack.c.bf16 %v417_v24, %v416_v23  ;;  %v448_v38 = vld [vmem:[#allocation2 + $0x7] sm:$0xff]  ;;  %v1368_v41 = vpack.c.bf16 %v419_v26, %v418_v25  ;;  %v2138_v42 = vld [vmem:[#allocation7] ss:$0 sm:$0xff]  ;;  %s1267_s13 = sshll.u32 %s1765_s18, 4 }
  0xeb   : > { %1359 = vmatpush3.bf16.msra.mxu0 %v1356_v35  ;;  %1396 = vmatpush3.bf16.msra.mxu1 %v1356_v35  ;;  %v450_v39 = vld [vmem:[#allocation2 + $0x27] sm:$0xff]  ;;  %v2140_v43 = vld [vmem:[#allocation7 + $0x4] ss:$0 sm:$0xff]  ;;  %v473_v45 = vmul.f32 %v2138_v42, %v448_v38  ;;  %v1372_v48 = vpack.c.bf16 %v421_v28, %v420_v27  ;;  %v2146_v49 = vpack.c.bf16 %v423_v30, %v422_v29  ;;  %v2151_v53 = vld [vmem:[#allocation7 + $0x1] ss:$0 sm:$0xff]  ;;  %s1259_s14 = sshll.u32 %s1769_s19, 5 }
  0xec   : > { %1361 = vmatprep.subr.bf16.mxu0 %v1360_v36  ;;  %1389 = vmatprep.subr.bf16.mxu1 %v1360_v36  ;;  %v452_v40 = vld [vmem:[#allocation2 + $0x47] sm:$0xff]  ;;  %v511_v46 = vmul.f32 %v2140_v43, %v450_v39  ;;  %v2148_v50 = vpack.c.bf16 %v425_v32, %v424_v31  ;;  %v2153_v54 = vld [vmem:[#allocation7 + $0x5] ss:$0 sm:$0xff]  ;;  %v2155_v55 = vpack.c.bf16 %v427_v34, %v426_v33  ;;  %v2169_v1 = vld [vmem:[#allocation7 + $0x2] ss:$0 sm:$0xff]  ;;  %s1066_s5 = sadd.s32 %s1267_s13, %s1259_s14  ;;  %s1069_s9 = sshll.u32 %s2067_s4, 4  ;;  %s2593_s9 = int_to_ptr.vmem [resolvable:$true] %s1069_s9 }
  0xed   : > { %v2142_v44 = vld [vmem:[#allocation7 + $0x8] ss:$0 sm:$0xff]  ;;  %v2158_v59 = vld [vmem:[#allocation7 + $0x9] ss:$0 sm:$0xff]  ;;  %v2161_v61 = vmul.f32 %v2138_v42, %v450_v39  ;;  %v2164_v62 = vmul.f32 %v2138_v42, %v452_v40  ;;  %v2167_v63 = vmul.f32 %v2140_v43, %v452_v40  ;;  %v2171_v2 = vld [vmem:[#allocation7 + $0x6] ss:$0 sm:$0xff] }
  0xee   : > { %v581_v47 = vld [vmem:[#allocation2 + $0x8] sm:$0xff]  ;;  %v549_v51 = vmul.f32 %v2142_v44, %v452_v40  ;;  %v527_v56 = vadd.f32 %v511_v46, %v473_v45  ;;  %s1260_s7 = sshll.u32 %s1066_s5, 7  ;;  %s2722_s15 = sld [smem:[#allocation38_spill]] }
  0xef   : > { %1363 = vmatpush3.bf16.msra.mxu0 %v1360_v36  ;;  %1397 = vmatpush3.bf16.msra.mxu1 %v1360_v36  ;;  %v583_v52 = vld [vmem:[#allocation2 + $0x28] sm:$0xff]  ;;  %v606_v58 = vmul.f32 %v2151_v53, %v581_v47  ;;  %s1053_s26 = scalar_lea.sflag [#allocation6], %s2033_s30  ;;  %s1669_s28 = scalar_lea.vmem %s2593_s9, 2048 }
  0xf0   : > { %1365 = vmatprep.subr.bf16.mxu0 %v1364_v37  ;;  %1390 = vmatprep.subr.bf16.mxu1 %v1364_v37  ;;  %v585_v57 = vld [vmem:[#allocation2 + $0x48] sm:$0xff]  ;;  %v565_v3 = vadd.f32 %v549_v51, %v527_v56  ;;  %v2174_v4 = vmul.f32 %v2151_v53, %v583_v52  ;;  %v643_v6 = vmul.f32 %v2153_v54, %v583_v52  ;;  %p1670_p10 = scmp.ne.s32.totalorder %s2593_s9, %s1669_s28  ;;  %p2724_p0 = scmp.ne.s32.totalorder %s2693_s8, 0 }
  0xf1   : > { %v712_v60 = vld [vmem:[#allocation2 + $0x9] sm:$0xff]  ;;  %v2177_v5 = vmul.f32 %v2151_v53, %v585_v57  ;;  %v2185_v10 = vmul.f32 %v2153_v54, %v585_v57  ;;  %v680_v11 = vmul.f32 %v2158_v59, %v585_v57 }
  0xf2   : > { %v714_v0 = vld [vmem:[#allocation2 + $0x29] sm:$0xff]  ;;  %v737_v13 = vmul.f32 %v2169_v1, %v712_v60  ;;  %v622_v16 = vadd.f32 %v606_v58, %v565_v3  ;;  %p1671_p4 = pnand %p1670_p10, %p2724_p0 }
  0xf3   : > { %1367 = vmatpush3.bf16.msra.mxu0 %v1364_v37  ;;  %1398 = vmatpush3.bf16.msra.mxu1 %v1364_v37  ;;  %v2180_v7 = vld [vmem:[#allocation2 + $0x87] sm:$0xff]  ;;  %v2190_v14 = vmul.f32 %v2169_v1, %v714_v0  ;;  %v774_v20 = vmul.f32 %v2171_v2, %v714_v0  ;;  %v449_v34 = vld [vmem:[#allocation2 + $0xf] sm:$0xff] }
  0xf4   : > { %1369 = vmatprep.subr.bf16.mxu0 %v1368_v41  ;;  %1391 = vmatprep.subr.bf16.mxu1 %v1368_v41  ;;  %v2182_v8 = vld [vmem:[#allocation2 + $0xa7] sm:$0xff]  ;;  %v481_v18 = vmul.f32 %v2138_v42, %v2180_v7  ;;  %v659_v24 = vadd.f32 %v643_v6, %v622_v16  ;;  %v2230_v38 = vld [vmem:[#allocation2 + $0x2f] sm:$0xff]  ;;  %v474_v56 = vmul.f32 %v2138_v42, %v449_v34  ;;  %s2723_s25 = smov %s2722_s15  ;;  %s2591_s29 = scalar_lea.hbm %s2722_s15, %s1260_s7 }
  0xf5   : > { %2704 = vst [vmem:[#allocation27_spill] sm:$0xff] %v2182_v8  ;;  %v460_v9 = vld [vmem:[#allocation2 + $0xc7] sm:$0xff]  ;;  %v519_v21 = vmul.f32 %v2140_v43, %v2182_v8  ;;  %v2232_v39 = vld [vmem:[#allocation2 + $0x4f] sm:$0xff]  ;;  %v512_v0 = vmul.f32 %v2140_v43, %v2230_v38  ;;  %p1672_p8 = pneg %p1671_p4 }
  0xf6   : > { %v716_v12 = vld [vmem:[#allocation2 + $0x49] sm:$0xff]  ;;  %v557_v22 = vmul.f32 %v2142_v44, %v460_v9  ;;  %v2212_v27 = vmul.f32 %v2138_v42, %v460_v9  ;;  %v2215_v29 = vmul.f32 %v2140_v43, %v460_v9  ;;  %v696_v35 = vadd.f32 %v680_v11, %v659_v24 }
  0xf7   : > { %v2192_v15 = vld [vmem:[#allocation7 + $0xa] ss:$0 sm:$0xff]  ;;  %1371 = vmatpush3.bf16.msra.mxu0 %v1368_v41  ;;  %1399 = vmatpush3.bf16.msra.mxu1 %v1368_v41  ;;  %v2195_v17 = vmul.f32 %v2169_v1, %v716_v12  ;;  %v2208_v25 = vmul.f32 %v2171_v2, %v716_v12  ;;  %v535_v30 = vadd.f32 %v519_v21, %v481_v18  ;;  %v582_v57 = vld [vmem:[#allocation2 + $0x10] sm:$0xff] }
  0xf8   : > { %v2199_v19 = vld [vmem:[#allocation2 + $0x88] sm:$0xff]  ;;  %1373 = vmatprep.subr.bf16.mxu0 %v1372_v48  ;;  %1392 = vmatprep.subr.bf16.mxu1 %v1372_v48  ;;  %v811_v26 = vmul.f32 %v2192_v15, %v716_v12  ;;  %v753_v47 = vadd.f32 %v737_v13, %v696_v35  ;;  %v550_v3 = vmul.f32 %v2142_v44, %v2232_v39  ;;  %v2256_v6 = vld [vmem:[#allocation2 + $0x30] sm:$0xff] }
  0xf9   : > { %2705 = vst [vmem:[#allocation28_spill] sm:$0xff] %v2195_v17  ;;  %v2205_v23 = vld [vmem:[#allocation2 + $0xa8] sm:$0xff]  ;;  %v614_v31 = vmul.f32 %v2151_v53, %v2199_v19  ;;  %v573_v40 = vadd.f32 %v557_v22, %v535_v30  ;;  %v528_v22 = vadd.f32 %v512_v0, %v474_v56  ;;  %v2273_v24 = vld [vmem:[#allocation2 + $0x50] sm:$0xff]  ;;  %v644_v34 = vmul.f32 %v2153_v54, %v2256_v6 }
  0xfa   : > { %2706 = vst [vmem:[#allocation29_spill] sm:$0xff] %v2205_v23  ;;  %v593_v28 = vld [vmem:[#allocation2 + $0xc8] sm:$0xff]  ;;  %v2221_v32 = vmul.f32 %v2151_v53, %v2205_v23  ;;  %v651_v37 = vmul.f32 %v2153_v54, %v2205_v23  ;;  %v790_v11 = vadd.f32 %v774_v20, %v753_v47  ;;  %v713_v20 = vld [vmem:[#allocation2 + $0x11] sm:$0xff] }
  0xfb   : > { %v2223_v33 = vld [vmem:[#allocation2 + $0x89] sm:$0xff]  ;;  %1375 = vmatpush3.bf16.msra.mxu0 %v1372_v48  ;;  %1400 = vmatpush3.bf16.msra.mxu1 %v1372_v48  ;;  %v2226_v36 = vmul.f32 %v2151_v53, %v593_v28  ;;  %v2237_v41 = vmul.f32 %v2153_v54, %v593_v28  ;;  %v688_v45 = vmul.f32 %v2158_v59, %v593_v28  ;;  %v2285_v56 = vld [vmem:[#allocation2 + $0x51] sm:$0xff] }
  0xfc   : > { %2707 = vst [vmem:[#allocation30_spill] sm:$0xff] %v2223_v33  ;;  %1377 = vmatprep.subr.bf16.mxu0 %v2146_v49  ;;  %1393 = vmatprep.subr.bf16.mxu1 %v2146_v49  ;;  %v2240_v46 = vld [vmem:[#allocation2 + $0xa9] sm:$0xff]  ;;  %v745_v51 = vmul.f32 %v2169_v1, %v2223_v33  ;;  %v630_v58 = vadd.f32 %v614_v31, %v573_v40 }
  0xfd   : > { %2708 = vst [vmem:[#allocation31_spill] sm:$0xff] %v2226_v36  ;;  %2709 = vst [vmem:[#allocation32_spill] sm:$0xff] %v2240_v46  ;;  %v724_v48 = vld [vmem:[#allocation2 + $0xc9] sm:$0xff]  ;;  %v2246_v52 = vmul.f32 %v2169_v1, %v2240_v46  ;;  %v782_v12 = vmul.f32 %v2171_v2, %v2240_v46  ;;  %v827_v30 = vadd.f32 %v811_v26, %v790_v11 }
  0xfe   : > { %v2250_v60 = vmul.f32 %v2169_v1, %v724_v48  ;;  %v2258_v9 = vld [vmem:[#allocation2 + $0x8f] sm:$0xff]  ;;  %v2265_v13 = vmul.f32 %v2171_v2, %v724_v48  ;;  %v667_v21 = vadd.f32 %v651_v37, %v630_v58  ;;  %v819_v31 = vmul.f32 %v2192_v15, %v724_v48  ;;  %v2300_v11 = vld [vmem:[#allocation2 + $0x67] sm:$0xff] }
  0xff   : > { %1379 = vmatpush3.bf16.msra.mxu0 %v2146_v49  ;;  %1401 = vmatpush3.bf16.msra.mxu1 %v2146_v49  ;;  %v2267_v16 = vld [vmem:[#allocation2 + $0xaf] sm:$0xff]  ;;  %v607_v49 = vmul.f32 %v2151_v53, %v582_v57  ;;  %v482_v35 = vmul.f32 %v2138_v42, %v2258_v9  ;;  %v566_v47 = vadd.f32 %v550_v3, %v528_v22  ;;  %v843_v48 = vmax.f32 %v827_v30, 0.0 }
 0x100   : > { %2710 = vst [vmem:[#allocation33_spill] sm:$0xff] %v2250_v60  ;;  %v2269_v18 = vld [vmem:[#allocation2 + $0xcf] sm:$0xff]  ;;  %1381 = vmatprep.subr.bf16.mxu0 %v2148_v50  ;;  %1394 = vmatprep.subr.bf16.mxu1 %v2148_v50  ;;  %v704_v40 = vadd.f32 %v688_v45, %v667_v21  ;;  %v520_v57 = vmul.f32 %v2140_v43, %v2267_v16 }
 0x101   : > { %v2276_v28 = vld [vmem:[#allocation2 + $0x90] sm:$0xff]  ;;  %v558_v26 = vmul.f32 %v2142_v44, %v2269_v18  ;;  %v681_v45 = vmul.f32 %v2158_v59, %v2273_v24  ;;  %v738_v0 = vmul.f32 %v2169_v1, %v713_v20  ;;  %v623_v22 = vadd.f32 %v607_v49, %v566_v47  ;;  %1332 = vmatprep.mubr.f32.mxu0 %v843_v48  ;;  %v2322_v48 = vld [vmem:[#allocation2 + $0xe7] sm:$0xff] }
 0x102   : > { %2711 = vst [vmem:[#allocation34_spill] sm:$0xff] %v2276_v28  ;;  %v2283_v37 = vld [vmem:[#allocation2 + $0x31] sm:$0xff]  ;;  %v615_v3 = vmul.f32 %v2151_v53, %v2276_v28  ;;  %v761_v21 = vadd.f32 %v745_v51, %v704_v40  ;;  %v536_v46 = vadd.f32 %v520_v57, %v482_v35  ;;  %v812_v30 = vmul.f32 %v2192_v15, %v2285_v56  ;;  %v2320_v57 = vld [vmem:[#allocation2 + $0x68] sm:$0xff] }
 0x103   : > { %v2291_v58 = vld [vmem:[#allocation2 + $0xb0] sm:$0xff]  ;;  %1383 = vmatpush3.bf16.msra.mxu0 %v2148_v50  ;;  %1402 = vmatpush3.bf16.msra.mxu1 %v2148_v50  ;;  %v775_v20 = vmul.f32 %v2171_v2, %v2283_v37  ;;  %v529_v28 = vadd.f32 %v2167_v63, %v2161_v61  ;;  %v660_v49 = vadd.f32 %v644_v34, %v623_v22 }
 0x104   : > { %1385 = vmatprep.subr.bf16.mxu0 %v2155_v55  ;;  %1395 = vmatprep.subr.bf16.mxu1 %v2155_v55  ;;  %v2304_v23 = vld [vmem:[#allocation2 + $0xd0] sm:$0xff]  ;;  %v652_v60 = vmul.f32 %v2153_v54, %v2291_v58  ;;  %v798_v51 = vadd.f32 %v782_v12, %v761_v21  ;;  %v574_v35 = vadd.f32 %v558_v26, %v536_v46 }
 0x105   : > { %v2306_v50 = vld [vmem:[#allocation2 + $0x91] sm:$0xff]  ;;  %v551_v47 = vmul.f32 %v2142_v44, %v2300_v11  ;;  %v689_v17 = vmul.f32 %v2158_v59, %v2304_v23  ;;  %v483_v63 = vmul.f32 %v2138_v42, %v2182_v8  ;;  %v697_v12 = vadd.f32 %v681_v45, %v660_v49 }
 0x106   : > { %2712 = vst [vmem:[#allocation35_spill] sm:$0xff] %v2306_v50  ;;  %v2316_v40 = vld [vmem:[#allocation2 + $0xb1] sm:$0xff]  ;;  %v746_v61 = vmul.f32 %v2169_v1, %v2306_v50  ;;  %v835_v46 = vadd.f32 %v819_v31, %v798_v51  ;;  %v631_v34 = vadd.f32 %v615_v3, %v574_v35  ;;  %v682_v33 = vmul.f32 %v2158_v59, %v2320_v57  ;;  %v2344_v3 = vld [vmem:[#allocation2 + $0xe8] sm:$0xff] }
 0x107   : > { %1387 = vmatpush3.bf16.msra.mxu0 %v2155_v55  ;;  %1403 = vmatpush3.bf16.msra.mxu1 %v2155_v55  ;;  %v567_v26 = vadd.f32 %v551_v47, %v529_v28  ;;  %v2332_v21 = vld [vmem:[#allocation2 + $0x6f] sm:$0xff]  ;;  %v783_v55 = vmul.f32 %v2171_v2, %v2316_v40  ;;  %v537_v36 = vadd.f32 %v2215_v29, %v483_v63 }
 0x108   : > { %v2334_v22 = vld [vmem:[#allocation2 + $0xd1] sm:$0xff]  ;;  %v559_v50 = vmul.f32 %v2142_v44, %v2322_v48  ;;  %v851_v8 = vmax.f32 %v835_v46, 0.0  ;;  %v754_v31 = vadd.f32 %v738_v0, %v697_v12  ;;  %v668_v45 = vadd.f32 %v652_v60, %v631_v34  ;;  %v2346_v51 = vld [vmem:[#allocation2 + $0x69] sm:$0xff] }
 0x109   : > { %v624_v28 = vadd.f32 %v2174_v4, %v567_v26  ;;  %v476_v35 = vmul.f32 %v2138_v42, %v2230_v38  ;;  %v514_v47 = vmul.f32 %v2140_v43, %v2232_v39  ;;  %v552_v29 = vmul.f32 %v2142_v44, %v2332_v21  ;;  %v2357_v46 = vld [vmem:[#allocation2 + $0x70] sm:$0xff] }
 0x10a   : > { %v575_v49 = vadd.f32 %v559_v50, %v537_v36  ;;  %1344 = vmatprep.mubr.f32.mxu1 %v851_v8  ;;  %v791_v63 = vadd.f32 %v775_v20, %v754_v31  ;;  %v705_v0 = vadd.f32 %v689_v17, %v668_v45  ;;  %v820_v4 = vmul.f32 %v2192_v15, %v2334_v22  ;;  %v2366_v26 = vld [vmem:[#allocation2 + $0xef] sm:$0xff] }
 0x10b   : > { %v661_v60 = vadd.f32 %v2185_v10, %v624_v28  ;;  %v690_v38 = vmul.f32 %v2158_v59, %v2344_v3  ;;  %v530_v50 = vadd.f32 %v514_v47, %v476_v35  ;;  %v609_v12 = vmul.f32 %v2151_v53, %v2256_v6  ;;  %v2369_v31 = vld [vmem:[#allocation2 + $0xe9] sm:$0xff]  ;;  %v2378_v47 = vld [vmem:[#allocation2 + $0x71] sm:$0xff] }
 0x10c   : > { %v632_v36 = vadd.f32 %v2221_v32, %v575_v49  ;;  %v828_v34 = vadd.f32 %v812_v30, %v791_v63  ;;  %v762_v8 = vadd.f32 %v746_v61, %v705_v0  ;;  %v813_v17 = vmul.f32 %v2192_v15, %v2346_v51 }
 0x10d   : > { %v698_v20 = vadd.f32 %v682_v33, %v661_v60  ;;  %v568_v32 = vadd.f32 %v552_v29, %v530_v50  ;;  %v646_v45 = vmul.f32 %v2153_v54, %v2273_v24  ;;  %v683_v28 = vmul.f32 %v2158_v59, %v2357_v46  ;;  %v2390_v50 = vld [vmem:[#allocation2 + $0xf0] sm:$0xff] }
 0x10e   : > { %v669_v10 = vadd.f32 %v2237_v41, %v632_v36  ;;  %v844_v6 = vmax.f32 %v828_v34, 0.0  ;;  %v799_v30 = vadd.f32 %v783_v55, %v762_v8  ;;  %v484_v61 = vmul.f32 %v2138_v42, %v2267_v16 }
 0x10f   : > { %v755_v33 = vadd.f32 %v2190_v14, %v698_v20  ;;  %v625_v35 = vadd.f32 %v609_v12, %v568_v32  ;;  %v522_v41 = vmul.f32 %v2140_v43, %v2269_v18  ;;  %v560_v29 = vmul.f32 %v2142_v44, %v2366_v26  ;;  %v2401_v32 = vld [vmem:[#allocation2 + $0xf1] sm:$0xff] }
 0x110   : > { %v706_v49 = vadd.f32 %v690_v38, %v669_v10  ;;  %1333 = vmatmul.mubr.f32.vlgmr.msra.gmra.mrb[0].mxu0 %v844_v6  ;;  %v836_v63 = vadd.f32 %v820_v4, %v799_v30  ;;  %v821_v14 = vmul.f32 %v2192_v15, %v2369_v31  ;;  %v740_v55 = vmul.f32 %v2169_v1, %v2283_v37 }
 0x111   : > { %v792_v0 = vadd.f32 %v2208_v25, %v755_v33  ;;  %v662_v36 = vadd.f32 %v646_v45, %v625_v35  ;;  %v538_v38 = vadd.f32 %v522_v41, %v484_v61  ;;  %v617_v12 = vmul.f32 %v2151_v53, %v2291_v58  ;;  %v2409_v33 = vld [vmem:[#allocation2 + $0x107] sm:$0xff] }
 0x112   : > { %v763_v60 = vadd.f32 %v2246_v52, %v706_v49  ;;  %v852_v34 = vmax.f32 %v836_v63, 0.0  ;;  %v777_v25 = vmul.f32 %v2171_v2, %v2285_v56  ;;  %v814_v4 = vmul.f32 %v2192_v15, %v2378_v47 }
 0x113   : > { %v829_v8 = vadd.f32 %v813_v17, %v792_v0  ;;  %v699_v37 = vadd.f32 %v683_v28, %v662_v36  ;;  %v576_v10 = vadd.f32 %v560_v29, %v538_v38  ;;  %v654_v52 = vmul.f32 %v2153_v54, %v2304_v23 }
 0x114   : > { %v800_v20 = vadd.f32 %v2265_v13, %v763_v60  ;;  %1345 = vmatmul.mubr.f32.vlgmr.msra.gmra.mrb[0].mxu1 %v852_v34  ;;  %v691_v17 = vmul.f32 %v2158_v59, %v2390_v50  ;;  %v515_v6 = vmul.f32 %v2140_v43, %v2300_v11  ;;  %v553_v30 = vmul.f32 %v2142_v44, %v2180_v7 }
 0x115   : > { %v845_v45 = vmax.f32 %v829_v8, 0.0  ;;  %v756_v28 = vadd.f32 %v740_v55, %v699_v37  ;;  %v633_v61 = vadd.f32 %v617_v12, %v576_v10  ;;  %v748_v49 = vmul.f32 %v2169_v1, %v2316_v40  ;;  %v2427_v8 = vld [vmem:[#allocation2 + $0x108] sm:$0xff] }
 0x116   : > { %v837_v13 = vadd.f32 %v821_v14, %v800_v20  ;;  %v785_v35 = vmul.f32 %v2171_v2, %v2334_v22  ;;  %v822_v41 = vmul.f32 %v2192_v15, %v2401_v32  ;;  %v531_v29 = vadd.f32 %v515_v6, %v2164_v62 }
 0x117   : > { %1335 = vmatprep.mubr.f32.mxu0 %v845_v45  ;;  %v523_v63 = vmul.f32 %v2140_v43, %v2322_v48  ;;  %v793_v60 = vadd.f32 %v777_v25, %v756_v28  ;;  %v670_v14 = vadd.f32 %v654_v52, %v633_v61  ;;  %v561_v55 = vmul.f32 %v2142_v44, %v2409_v33  ;;  %v2434_v45 = vld [vmem:[#allocation2 + $0x109] sm:$0xff] }
 0x118   : > { %v853_v0 = vmax.f32 %v837_v13, 0.0  ;;  %v569_v36 = vadd.f32 %v553_v30, %v531_v29  ;;  %v647_v38 = vmul.f32 %v2153_v54, %v2320_v57  ;;  %v684_v12 = vmul.f32 %v2158_v59, %v2199_v19  ;;  %v2713_v61 = vld [vmem:[#allocation31_spill] sm:$0xff] }
 0x119   : > { %v539_v34 = vadd.f32 %v523_v63, %v2212_v27  ;;  %v830_v62 = vadd.f32 %v814_v4, %v793_v60  ;;  %v707_v20 = vadd.f32 %v691_v17, %v670_v14  ;;  %v778_v25 = vmul.f32 %v2171_v2, %v2346_v51  ;;  %v2714_v60 = vld [vmem:[#allocation30_spill] sm:$0xff] }
 0x11a   : > { %1347 = vmatprep.mubr.f32.mxu1 %v853_v0  ;;  %v655_v37 = vmul.f32 %v2153_v54, %v2344_v3  ;;  %v626_v10 = vadd.f32 %v2177_v5, %v569_v36  ;;  %v478_v6 = vmul.f32 %v2138_v42, %v2232_v39  ;;  %v516_v27 = vmul.f32 %v2140_v43, %v2332_v21  ;;  %v2447_v0 = vld [vmem:[#allocation2 + $0x10f] sm:$0xff] }
 0x11b   : > { %v577_v52 = vadd.f32 %v561_v55, %v539_v34  ;;  %v846_v30 = vmax.f32 %v830_v62, 0.0  ;;  %v764_v4 = vadd.f32 %v748_v49, %v707_v20  ;;  %v692_v17 = vmul.f32 %v2158_v59, %v2427_v8 }
 0x11c   : > { %v554_v13 = vmul.f32 %v2142_v44, %v2258_v9  ;;  %v663_v28 = vadd.f32 %v647_v38, %v626_v10  ;;  %v532_v29 = vadd.f32 %v516_v27, %v478_v6  ;;  %v611_v63 = vmul.f32 %v2151_v53, %v2273_v24 }
 0x11d   : > { %v634_v5 = vadd.f32 %v2713_v61, %v577_v52  ;;  %1336 = vmatmul.mubr.f32.gmra.mrb[2].mxu0 %v846_v30  ;;  %v801_v39 = vadd.f32 %v785_v35, %v764_v4  ;;  %v815_v49 = vmul.f32 %v2192_v15, %v2714_v60  ;;  %v786_v14 = vmul.f32 %v2171_v2, %v2369_v31  ;;  %v2715_v52 = vld [vmem:[#allocation28_spill] sm:$0xff]  ;;  %v2717_v61 = vld [vmem:[#allocation33_spill] sm:$0xff] }
 0x11e   : > { %v823_v55 = vmul.f32 %v2192_v15, %v2434_v45  ;;  %v700_v36 = vadd.f32 %v684_v12, %v663_v28  ;;  %v570_v34 = vadd.f32 %v554_v13, %v532_v29  ;;  %v648_v62 = vmul.f32 %v2153_v54, %v2357_v46  ;;  %v2716_v12 = vld [vmem:[#allocation34_spill] sm:$0xff] }
 0x11f   : > { %v671_v38 = vadd.f32 %v655_v37, %v634_v5  ;;  %v838_v24 = vadd.f32 %v822_v41, %v801_v39  ;;  %v486_v20 = vmul.f32 %v2138_v42, %v2269_v18  ;;  %v524_v35 = vmul.f32 %v2140_v43, %v2366_v26 }
 0x120   : > { %v562_v10 = vmul.f32 %v2142_v44, %v2447_v0  ;;  %v757_v6 = vadd.f32 %v2715_v52, %v700_v36  ;;  %v627_v30 = vadd.f32 %v611_v63, %v570_v34  ;;  %v685_v37 = vmul.f32 %v2158_v59, %v2716_v12  ;;  %v2718_v63 = vld [vmem:[#allocation35_spill] sm:$0xff] }
 0x121   : > { %v708_v27 = vadd.f32 %v692_v17, %v671_v38  ;;  %v854_v4 = vmax.f32 %v838_v24, 0.0  ;;  %v742_v41 = vmul.f32 %v2169_v1, %v2285_v56  ;;  %v540_v13 = vadd.f32 %v524_v35, %v486_v20  ;;  %v2473_v17 = vld [vmem:[#allocation2 + $0x110] sm:$0xff] }
 0x122   : > { %v619_v18 = vmul.f32 %v2151_v53, %v2304_v23  ;;  %v794_v28 = vadd.f32 %v778_v25, %v757_v6  ;;  %v664_v29 = vadd.f32 %v648_v62, %v627_v30  ;;  %v779_v39 = vmul.f32 %v2171_v2, %v2378_v47  ;;  %v2719_v52 = vld [vmem:[#allocation27_spill] sm:$0xff] }
 0x123   : > { %v765_v5 = vadd.f32 %v2717_v61, %v708_v27  ;;  %1348 = vmatmul.mubr.f32.gmra.mrb[2].mxu1 %v854_v4  ;;  %v816_v36 = vmul.f32 %v2192_v15, %v2718_v63  ;;  %v578_v38 = vadd.f32 %v562_v10, %v540_v13  ;;  %v656_v56 = vmul.f32 %v2153_v54, %v2390_v50 }
 0x124   : > { %v479_v23 = vmul.f32 %v2138_v42, %v2300_v11  ;;  %v831_v25 = vadd.f32 %v815_v49, %v794_v28  ;;  %v701_v24 = vadd.f32 %v685_v37, %v664_v29  ;;  %v517_v62 = vmul.f32 %v2140_v43, %v2180_v7  ;;  %v466_v49 = vld [vmem:[#allocation2 + $0x127] sm:$0xff]  ;;  %v2493_v28 = vld [vmem:[#allocation2 + $0x111] sm:$0xff] }
 0x125   : > { %v802_v34 = vadd.f32 %v786_v14, %v765_v5  ;;  %v635_v20 = vadd.f32 %v619_v18, %v578_v38  ;;  %v693_v35 = vmul.f32 %v2158_v59, %v2473_v17  ;;  %v555_v6 = vmul.f32 %v2142_v44, %v2719_v52 }
 0x126   : > { %v612_v10 = vmul.f32 %v2151_v53, %v2320_v57  ;;  %v847_v27 = vmax.f32 %v831_v25, 0.0  ;;  %v758_v4 = vadd.f32 %v742_v41, %v701_v24  ;;  %v533_v11 = vadd.f32 %v517_v62, %v479_v23 }
 0x127   : > { %v839_v30 = vadd.f32 %v823_v55, %v802_v34  ;;  %v672_v14 = vadd.f32 %v656_v56, %v635_v20  ;;  %v750_v37 = vmul.f32 %v2169_v1, %v2334_v22  ;;  %v787_v7 = vmul.f32 %v2171_v2, %v2401_v32  ;;  %v2720_v56 = vld [vmem:[#allocation29_spill] sm:$0xff]  ;;  %v599_v34 = vld [vmem:[#allocation2 + $0x128] sm:$0xff] }
 0x128   : > { %1338 = vmatprep.mubr.f32.mxu0 %v847_v27  ;;  %v795_v18 = vadd.f32 %v779_v39, %v758_v4  ;;  %v571_v61 = vadd.f32 %v555_v6, %v533_v11  ;;  %v649_v57 = vmul.f32 %v2153_v54, %v2199_v19  ;;  %v487_v41 = vmul.f32 %v2138_v42, %v2322_v48 }
 0x129   : > { %v855_v13 = vmax.f32 %v839_v30, 0.0  ;;  %v709_v55 = vadd.f32 %v693_v35, %v672_v14  ;;  %v525_v5 = vmul.f32 %v2140_v43, %v2409_v33  ;;  %v563_v22 = vmul.f32 %v2142_v44, %v466_v49  ;;  %v2721_v14 = vld [vmem:[#allocation32_spill] sm:$0xff] }
 0x12a   : > { %v832_v29 = vadd.f32 %v816_v36, %v795_v18  ;;  %v628_v38 = vadd.f32 %v612_v10, %v571_v61  ;;  %v686_v39 = vmul.f32 %v2158_v59, %v2720_v56  ;;  %v824_v25 = vmul.f32 %v2192_v15, %v2493_v28 }
 0x12b   : > { %1350 = vmatprep.mubr.f32.mxu1 %v855_v13  ;;  %v766_v23 = vadd.f32 %v750_v37, %v709_v55  ;;  %v541_v19 = vadd.f32 %v525_v5, %v487_v41  ;;  %v620_v48 = vmul.f32 %v2151_v53, %v2344_v3  ;;  %v743_v33 = vmul.f32 %v2169_v1, %v2346_v51 }
 0x12c   : > { %v848_v24 = vmax.f32 %v832_v29, 0.0  ;;  %v665_v62 = vadd.f32 %v649_v57, %v628_v38  ;;  %v657_v36 = vmul.f32 %v2153_v54, %v2427_v8  ;;  %v480_v52 = vmul.f32 %v2138_v42, %v2332_v21  ;;  %v467_v21 = vld [vmem:[#allocation2 + $0x12f] sm:$0xff] }
 0x12d   : > { %v803_v20 = vadd.f32 %v787_v7, %v766_v23  ;;  %v579_v35 = vadd.f32 %v563_v22, %v541_v19  ;;  %v518_v6 = vmul.f32 %v2140_v43, %v2258_v9  ;;  %v780_v3 = vmul.f32 %v2171_v2, %v2714_v60  ;;  %v730_v57 = vld [vmem:[#allocation2 + $0x129] sm:$0xff] }
 0x12e   : > { %1339 = vmatmul.mubr.f32.gmra.mrb[4].mxu0 %v848_v24  ;;  %v702_v10 = vadd.f32 %v686_v39, %v665_v62  ;;  %v694_v27 = vmul.f32 %v2158_v59, %v599_v34  ;;  %v556_v51 = vmul.f32 %v2142_v44, %v2267_v16  ;;  %v613_v11 = vmul.f32 %v2151_v53, %v2357_v46  ;;  %v731_v62 = vld [vmem:[#allocation2 + $0x131] sm:$0xff] }
 0x12f   : > { %v840_v30 = vadd.f32 %v824_v25, %v803_v20  ;;  %v636_v8 = vadd.f32 %v620_v48, %v579_v35  ;;  %v534_v4 = vadd.f32 %v518_v6, %v480_v52  ;;  %v817_v9 = vmul.f32 %v2192_v15, %v2721_v14  ;;  %v1005_v52 = vld [vmem:[%s2039_s6 + $0x8] sm:$0xff] }
 0x130   : > { %v759_v49 = vadd.f32 %v743_v33, %v702_v10  ;;  %v751_v37 = vmul.f32 %v2169_v1, %v2369_v31  ;;  %v650_v60 = vmul.f32 %v2153_v54, %v2716_v12  ;;  %v488_v18 = vmul.f32 %v2138_v42, %v2366_v26 }
 0x131   : > { %v856_v7 = vmax.f32 %v840_v30, 0.0  ;;  %v673_v13 = vadd.f32 %v657_v36, %v636_v8  ;;  %v572_v16 = vadd.f32 %v556_v51, %v534_v4  ;;  %v526_v46 = vmul.f32 %v2140_v43, %v2447_v0  ;;  %v600_v0 = vld [vmem:[#allocation2 + $0x130] sm:$0xff] }
 0x132   : > { %v796_v61 = vadd.f32 %v780_v3, %v759_v49  ;;  %v564_v55 = vmul.f32 %v2142_v44, %v467_v21  ;;  %v788_v31 = vmul.f32 %v2171_v2, %v2434_v45  ;;  %v687_v12 = vmul.f32 %v2158_v59, %v2291_v58  ;;  %v1013_v3 = vld [vmem:[%s2039_s6 + $0x48] sm:$0xff]  ;;  %v1006_v21 = vld [vmem:[%s2039_s6 + $0x10] sm:$0xff] }
 0x133   : > { %1351 = vmatmul.mubr.f32.gmra.mrb[4].mxu1 %v856_v7  ;;  %v710_v41 = vadd.f32 %v694_v27, %v673_v13  ;;  %v629_v5 = vadd.f32 %v613_v11, %v572_v16  ;;  %v542_v29 = vadd.f32 %v526_v46, %v488_v18  ;;  %v621_v42 = vmul.f32 %v2151_v53, %v2390_v50  ;;  %v1007_v11 = vld [vmem:[%s2039_s6 + $0x18] sm:$0xff]  ;;  %v1014_v7 = vld [vmem:[%s2039_s6 + $0x50] sm:$0xff]  ;;  %v1008_v46 = vld [vmem:[%s2039_s6 + $0x20] sm:$0xff] }
 0x134   : > { %v833_v22 = vadd.f32 %v817_v9, %v796_v61  ;;  %v825_v38 = vmul.f32 %v2192_v15, %v730_v57  ;;  %v744_v44 = vmul.f32 %v2169_v1, %v2378_v47  ;;  %v658_v45 = vmul.f32 %v2153_v54, %v2473_v17  ;;  %v1009_v57 = vld [vmem:[%s2039_s6 + $0x28] sm:$0xff] }
 0x135   : > { %v767_v26 = vadd.f32 %v751_v37, %v710_v41  ;;  %v666_v43 = vadd.f32 %v650_v60, %v629_v5  ;;  %v580_v39 = vadd.f32 %v564_v55, %v542_v29  ;;  %v781_v25 = vmul.f32 %v2171_v2, %v2718_v63  ;;  %v1015_v60 = vld [vmem:[%s2039_s6 + $0x58] sm:$0xff] }
 0x136   : > { %v849_v56 = vmax.f32 %v833_v22, 0.0  ;;  %v695_v50 = vmul.f32 %v2158_v59, %v600_v0  ;;  %v818_v47 = vmul.f32 %v2192_v15, %v2316_v40  ;;  %v752_v24 = vmul.f32 %v2169_v1, %v2401_v32  ;;  %v1016_v22 = vld [vmem:[%s2039_s6 + $0x60] sm:$0xff] }
 0x137   : > { %v804_v23 = vadd.f32 %v788_v31, %v767_v26  ;;  %v703_v58 = vadd.f32 %v687_v12, %v666_v43  ;;  %v637_v53 = vadd.f32 %v621_v42, %v580_v39  ;;  %v789_v63 = vmul.f32 %v2171_v2, %v2493_v28  ;;  %v1004_v2 = vld [vmem:[%s2039_s6] sm:$0xff]  ;;  %v1017_v12 = vld [vmem:[%s2039_s6 + $0x68] sm:$0xff]  ;;  %v1011_v43 = vld [vmem:[%s2039_s6 + $0x38] sm:$0xff] }
 0x138   : > { %1341 = vmatprep.mubr.f32.mxu0 %v849_v56  ;;  %v826_v40 = vmul.f32 %v2192_v15, %v731_v62  ;;  %v1012_v15 = vld [vmem:[%s2039_s6 + $0x40] sm:$0xff] }
 0x139   : > { %v841_v19 = vadd.f32 %v825_v38, %v804_v23  ;;  %v760_v34 = vadd.f32 %v744_v44, %v703_v58  ;;  %v674_v48 = vadd.f32 %v658_v45, %v637_v53  ;;  %v1010_v44 = vld [vmem:[%s2039_s6 + $0x30] sm:$0xff]  ;;  %v1019_v23 = vld [vmem:[%s2039_s6 + $0x78] sm:$0xff] }
 0x13a   : > { %v1018_v58 = vld [vmem:[%s2039_s6 + $0x70] sm:$0xff]  ;;  %s1796_s6 = smov [#allocation10]  }
 0x13b   : > { %v857_v54 = vmax.f32 %v841_v19, 0.0  ;;  %v797_v17 = vadd.f32 %v781_v25, %v760_v34  ;;  %v711_v33 = vadd.f32 %v695_v50, %v674_v48  ;;  %s1673_s12 = sshll.u32 %s1796_s6, 4  ;;  %s1674_s12 = int_to_ptr.vmem [resolvable:$false] %s1673_s12 }
 0x13c   : > { %s1675_s10 = scalar_lea.vmem %s1674_s12, 4096  ;;  %p1676_p13 = scmp.lt.s32.totalorder %s2593_s9, %s1674_s12 }
 0x13d   : > { %1353 = vmatprep.mubr.f32.mxu1 %v857_v54  ;;  %v834_v59 = vadd.f32 %v818_v47, %v797_v17  ;;  %v768_v36 = vadd.f32 %v752_v24, %v711_v33  ;;  %p1677_p3 = scmp.lt.s32.totalorder %s1675_s10, %s1669_s28 }
 0x13f   : > { %v850_v20 = vmax.f32 %v834_v59, 0.0  ;;  %v805_v1 = vadd.f32 %v789_v63, %v768_v36  ;;  %p1678_p7 = por %p1677_p3, %p1676_p13 }
 0x141   : > { %1342 = vmatmul.mubr.f32.gmra.mrb[6].mxu0 %v850_v20  ;;  %v842_v32 = vadd.f32 %v826_v40, %v805_v1  ;;  %p1679_p12 = pnand %p1678_p7, %p1672_p8 }
 0x143   : > { %v858_v35 = vmax.f32 %v842_v32, 0.0 }
 0x145   : > { %1354 = vmatmul.mubr.f32.gmra.mrb[6].mxu1 %v858_v35 }
 0x1e3   : > { %v1334_v28 = vpop.f32.mrb[0].mxu0 }
 0x1e4   : > { %v1021_v6 = vadd.f32 %v1334_v28, %v1005_v52  ;;  %v925_v10 = vpop.f32.mrb[1].mxu0 }
 0x1e5   : > { %v1020_v27 = vadd.f32 %v1004_v2, %v925_v10 }
 0x1e6   : > { %1037 = vst [vmem:[%s2067_s4 + $0x8] sm:$0xff] %v1021_v6 }
 0x1e7   : > { %v1346_v51 = vpop.f32.mrb[0].mxu1  ;;  %1036 = vst [vmem:[%s2067_s4] sm:$0xff] %v1020_v27 }
 0x1e8   : > { %v1029_v30 = vadd.f32 %v1346_v51, %v1013_v3  ;;  %v965_v8 = vpop.f32.mrb[1].mxu1 }
 0x1e9   : > { %v1028_v4 = vadd.f32 %v1012_v15, %v965_v8 }
 0x1ea   : > { %1045 = vst [vmem:[%s2067_s4 + $0x48] sm:$0xff] %v1029_v30 }
 0x1eb   : > { %1044 = vst [vmem:[%s2067_s4 + $0x40] sm:$0xff] %v1028_v4 }
 0x1f0   : > { %v1337_v49 = vpop.f32.mrb[2].mxu0 }
 0x1f1   : > { %v1023_v14 = vadd.f32 %v1337_v49, %v1007_v11  ;;  %v935_v9 = vpop.f32.mrb[3].mxu0 }
 0x1f2   : > { %v1022_v37 = vadd.f32 %v1006_v21, %v935_v9 }
 0x1f3   : > { %1039 = vst [vmem:[%s2067_s4 + $0x18] sm:$0xff] %v1023_v14 }
 0x1f4   : > { %1038 = vst [vmem:[%s2067_s4 + $0x10] sm:$0xff] %v1022_v37 }
 0x1f6   : > { %v1349_v13 = vpop.f32.mrb[2].mxu1 }
 0x1f7   : > { %v1031_v16 = vadd.f32 %v1349_v13, %v1015_v60  ;;  %v975_v18 = vpop.f32.mrb[3].mxu1 }
 0x1f8   : > { %v1030_v61 = vadd.f32 %v1014_v7, %v975_v18 }
 0x1f9   : > { %1047 = vst [vmem:[%s2067_s4 + $0x58] sm:$0xff] %v1031_v16 }
 0x1fa   : > { %1046 = vst [vmem:[%s2067_s4 + $0x50] sm:$0xff] %v1030_v61 }
 0x201   : > { %v1340_v55 = vpop.f32.mrb[4].mxu0 }
 0x202   : > { %v1025_v41 = vadd.f32 %v1340_v55, %v1009_v57  ;;  %v945_v31 = vpop.f32.mrb[5].mxu0 }
 0x203   : > { %v1024_v5 = vadd.f32 %v1008_v46, %v945_v31 }
 0x204   : > { %1041 = vst [vmem:[%s2067_s4 + $0x28] sm:$0xff] %v1025_v41 }
 0x205   : > { %1040 = vst [vmem:[%s2067_s4 + $0x20] sm:$0xff] %v1024_v5 }
 0x206   : > { %v1352_v29 = vpop.f32.mrb[4].mxu1 }
 0x207   : > { %v1033_v42 = vadd.f32 %v1352_v29, %v1017_v12  ;;  %v985_v26 = vpop.f32.mrb[5].mxu1 }
 0x208   : > { %v1032_v38 = vadd.f32 %v1016_v22, %v985_v26 }
 0x209   : > { %1049 = vst [vmem:[%s2067_s4 + $0x68] sm:$0xff] %v1033_v42 }
 0x20a   : > { %1048 = vst [vmem:[%s2067_s4 + $0x60] sm:$0xff] %v1032_v38 }
 0x214   : > { %v1343_v0 = vpop.f32.mrb[6].mxu0 }
 0x215   : > { %v1027_v56 = vadd.f32 %v1343_v0, %v1011_v43  ;;  %v955_v39 = vpop.f32.mrb[7].mxu0 }
 0x216   : > { %v1026_v45 = vadd.f32 %v1010_v44, %v955_v39 }
 0x217   : > { %1043 = vst [vmem:[%s2067_s4 + $0x38] sm:$0xff] %v1027_v56 }
 0x218   : > { %1042 = vst [vmem:[%s2067_s4 + $0x30] sm:$0xff] %v1026_v45  ;;  %v1355_v25 = vpop.f32.mrb[6].mxu1 }
 0x219   : > { %v1035_v53 = vadd.f32 %v1355_v25, %v1019_v23  ;;  %v995_v50 = vpop.f32.mrb[7].mxu1 }
 0x21a   : > { %v1034_v19 = vadd.f32 %v1018_v58, %v995_v50 }
 0x21b   : > { %1051 = vst [vmem:[%s2067_s4 + $0x78] sm:$0xff] %v1035_v53 }
 0x21c   : > { %1050 = vst [vmem:[%s2067_s4 + $0x70] sm:$0xff] %v1034_v19 }
 0x21d   : > { %1682 = shalt.err (!%p1679_p12)
}
 0x21e   : > { %s1683_s4 = scalar_lea.hbm %s2591_s29, 2048  ;;  %s1687_s23 = scalar_lea.hbm %s2723_s25, 8192 }
 0x21f   : > { %p1684_p11 = scmp.ne.s32.totalorder %s2591_s29, %s1683_s4  ;;  %p1688_p2 = scmp.lt.u32.totalorder %s2591_s29, %s2723_s25 }
 0x220   : > { %p1689_p1 = scmp.lt.u32.totalorder %s1687_s23, %s1683_s4  ;;  %p1691_p10 = scmp.lt.u32.totalorder %s1683_s4, %s2591_s29 }
 0x221   : > { %p1685_p5 = pnand %p1684_p11, %p2724_p0 }
 0x222   : > { %p1690_p9 = por %p1689_p1, %p1688_p2 }
 0x223   : > { %p1686_p6 = pneg %p1685_p5 }
 0x224   : > { %p1692_p4 = por %p1691_p10, %p1690_p9 }
 0x226   : > { %p1693_p8 = pnand %p1692_p4, %p1686_p6 }
 0x228   : > { %1696 = shalt.err (!%p1693_p8)
}
 0x229   : > { %s1797_s14 = smov 128   ;;  %s1798_s5 = smov 8  }
 0x22a   : > { %1422 = dma.vmem_to_hbm [thread:$0]  (%p2724_p0), %s2593_s9, 2048, %s2591_s29, %s1053_s26, %s1797_s14, %s1797_s14, %s1798_s5  }
 0x22b PF: > { %s2725_s7 = sld [smem:[#allocation24_spill]]  ;;  %s2726_s18 = sld [smem:[#allocation25_spill]] }
 0x22c   : > { %p1448_p13 = scmp.ge.s32.totalorder %s1781_s22, 2 }
 0x231   : > { %s1084_s19 = sand.u32 1, %s2725_s7   ;;  %p2727_p3 = scmp.ne.s32.totalorder %s2726_s18, 0 }
 0x232   : > { %s1085_s15 = scalar_lea.sflag [#allocation6], %s1084_s19 }
 0x233   : > { %p1436_p7 = pnand %p1448_p13, %p2727_p3 }
 0x235   : > { %1748 = dma.done.wait (!%p1436_p7), %s1085_s15, 2048  }
 0x236   : > { %1750 = vsyncadd (!%p1436_p7), %s1085_s15, 4294965248  ;;  %s21_s22 = sadd.s32 1, %s1781_s22   ;;  %s2728_s8 = sld [smem:[#allocation26_spill]] }
 0x237   : > { %p18_p12 = scmp.ge.s32.totalorder %s21_s22, 6   ;;  %s2729_s15 = smov %s1757_s16 }
 0x238   : > { %s2730_s16 = smov %s1761_s17  ;;  %s2731_s17 = smov %s1982_s2 }
 0x239   : > { %s2732_s18 = smov %s1773_s20  ;;  %s2733_s19 = smov %s1777_s21 }
 0x23a   : > { %s2735_s21 = smov %s2741_s11  ;;  %20 = sbr.rel (!%p18_p12) target bundleno = 12 (0xc), region = 173 }
 0x23c   : > { %s2734_s20 = smov %s2728_s8 }
 0x241   :  { %1090 = vsyncpa [#allocation5], 1 }
 0x242   :  { %1092 = vsyncpa [#allocation5 + $0x1], 1 }
 0x243   :  { %1093 = vsyncpa [#allocation8], 1 }
 0x244   :  { %1094 = vsyncpa [#allocation6], 1 }
 0x245   :  { %1096 = vsyncpa [#allocation6 + $0x1], 1 }
 0x246   :  { %1097 = vsyncmov [#allocation3] }
 0x249   :  { %s1098_s30 = vpop.sfrf %1097 }
 0x24a   :  { %p1263_p0 = scmp.ne.s32.totalorder %s1098_s30, 0 }
 0x24c   :  { %1102 = shalt.err (%p1263_p0)  }
 0x24d   :  { %1104 = vsyncmov [#allocation3 + $0x1] }
 0x250   :  { %s1105_s2 = vpop.sfrf %1104 }
 0x251   :  { %p1264_p11 = scmp.ne.s32.totalorder %s1105_s2, 0 }
 0x253   :  { %1109 = shalt.err (%p1264_p11)  }
 0x254   :  { %1111 = vsyncmov [#allocation3 + $0x2] }
 0x257   :  { %s1112_s9 = vpop.sfrf %1111 }
 0x258   :  { %p1265_p5 = scmp.ne.s32.totalorder %s1112_s9, 0 }
 0x25a   :  { %1116 = shalt.err (%p1265_p5)  }

</bundles_post_ra>
